<compile_context>
chip_gen: v6e
topology: v6e:2x2x1
jax: 0.10.0
libtpu: 0.0.40
codegen_flags: <defaults>
</compile_context>

<pallas_src>
import functools
import jax
import jax.numpy as jnp
from jax.experimental import pallas as pl
from jax.experimental.pallas import tpu as pltpu

# ---- model hyper-parameters (small, consistent with the module) ----
B = 2          # batch
T = 16         # block_size / sequence length
N_EMBD = 64    # n_embd
N_HEAD = 4     # n_head (n_embd must be divisible by n_head)
HEAD_SIZE = N_EMBD // N_HEAD
LN_EPS = 1e-5


def _layer_norm(h, g, b):
    # one-pass mean / variance: var = E[h^2] - mean^2
    mu = jnp.mean(h, axis=-1, keepdims=True)
    ms = jnp.mean(h * h, axis=-1, keepdims=True)
    var = ms - mu * mu
    return (h - mu) * jax.lax.rsqrt(var + LN_EPS) * g + b


def fcblock_kernel(x_ref, vec_ref, wA_ref, w2_ref, out_ref, *, batch, seq, n_head):
    c = x_ref.shape[-1]
    hd = c // n_head
    x = x_ref[...]                                     # (B*T, C) f32

    # ---- unpack the gain/bias slab (f32, one (8, 2C) tile) ----
    ln1g = vec_ref[0:1, 0:c]
    ln1b = vec_ref[1:2, 0:c]
    ln2g = vec_ref[2:3, 0:c]
    ln2b = vec_ref[3:4, 0:c]
    bp   = vec_ref[4:5, 0:c]
    b1   = vec_ref[5:6, 0:2 * c]
    b2   = vec_ref[6:7, 0:c]

    # ---- unpack the bf16 weight slab: [wqkv (3C) | pad (C) | w1 (2C) | wp (C)] ----
    wqkv = wA_ref[:, 0:3 * c]          # (C, 3C), head-major [q|k|v] per head, q pre-scaled
    w1   = wA_ref[:, 4 * c:6 * c]      # (C, 2C)
    wp   = wA_ref[:, 6 * c:7 * c]      # (C, C)

    # ---- x + sa(ln1(x)) ----
    h = _layer_norm(x, ln1g, ln1b)                                        # f32
    qkv = jnp.dot(h.astype(jnp.bfloat16), wqkv,
                  preferred_element_type=jnp.float32)                     # (B*T, 3C)

    # restructure to an (n_head*B, T, 3*hd) batch: one leading-axis concat,
    # per-head column slices only (no 4-D transpose).
    qkv_h = jnp.concatenate(
        [qkv[:, hh * 3 * hd:(hh + 1) * 3 * hd].reshape(batch, seq, 3 * hd)
         for hh in range(n_head)], axis=0)                                # (H*B, T, 3*hd)
    q = qkv_h[:, :, 0:hd]
    k = qkv_h[:, :, hd:2 * hd]
    v = qkv_h[:, :, 2 * hd:3 * hd]

    # additive causal mask bias (finite sentinel, broadcast over the 8-wide batch)
    row = jax.lax.broadcasted_iota(jnp.int32, (1, seq, seq), 1)
    col = jax.lax.broadcasted_iota(jnp.int32, (1, seq, seq), 2)
    mask_bias = jnp.where(row >= col, 0.0, -1e30).astype(jnp.float32)     # (1, T, T)

    s = jnp.einsum('bqd,bkd->bqk',
                   q.astype(jnp.bfloat16), k.astype(jnp.bfloat16),
                   preferred_element_type=jnp.float32) + mask_bias        # (H*B, T, T)
    s = s - jnp.max(s, axis=-1, keepdims=True)
    p = jnp.exp(s)
    p = p * pl.reciprocal(jnp.sum(p, axis=-1, keepdims=True), approx=True)
    # dropout on attention weights: identity in eval mode
    o = jnp.einsum('bqk,bkd->bqd',
                   p.astype(jnp.bfloat16), v.astype(jnp.bfloat16),
                   preferred_element_type=jnp.float32)                    # (H*B, T, hd)

    # merge heads back to one (B*T, C) tensor (head-order columns = wp row order)
    o_m = jnp.concatenate(
        [o[hh * batch:(hh + 1) * batch].reshape(batch * seq, hd)
         for hh in range(n_head)], axis=-1)                               # (B*T, C)

    # single K=C output-projection matmul + one residual add
    x1 = x + bp + jnp.dot(o_m.astype(jnp.bfloat16), wp,
                          preferred_element_type=jnp.float32)
    # dropout after proj: identity in eval mode

    # ---- x1 + ffwd(ln2(x1)) ----
    h2 = _layer_norm(x1, ln2g, ln2b)
    ff = jnp.dot(h2.astype(jnp.bfloat16), w1,
                 preferred_element_type=jnp.float32) + b1
    ff = jax.nn.sigmoid(ff)
    ff = jnp.dot(ff.astype(jnp.bfloat16), w2_ref[...],
                 preferred_element_type=jnp.float32) + b2
    # dropout at end of FC: identity in eval mode
    out_ref[...] = x1 + ff


def fcblock_pallas(x, params):
    (ln1g, ln1b, wq, wk, wv, wp, bp, ln2g, ln2b, w1, b1, w2, b2) = params
    Bsz, Tsz, C = x.shape
    H = N_HEAD
    hd = C // H
    scale = hd ** (-0.5)

    # head-major fused QKV weight; attention scale folded into the q columns
    wqkv_hm = jnp.concatenate(
        [jnp.concatenate([wq[:, h * hd:(h + 1) * hd] * scale,
                          wk[:, h * hd:(h + 1) * hd],
                          wv[:, h * hd:(h + 1) * hd]], axis=1)
         for h in range(H)], axis=1)                                       # (C, 3C)

    # one bf16 weight slab: [wqkv | C zeros (align pad) | w1 | wp]  -> (C, 7C)
    wA = jnp.concatenate(
        [wqkv_hm, jnp.zeros((C, C), wq.dtype), w1, wp], axis=1
    ).astype(jnp.bfloat16)
    w2b = w2.astype(jnp.bfloat16)                                          # (2C, C)

    # one (8, 2C) f32 slab holding every gain / bias vector
    vecs = jnp.zeros((8, 2 * C), jnp.float32)
    vecs = vecs.at[0, :C].set(ln1g[0]).at[1, :C].set(ln1b[0])
    vecs = vecs.at[2, :C].set(ln2g[0]).at[3, :C].set(ln2b[0])
    vecs = vecs.at[4, :C].set(bp[0])
    vecs = vecs.at[5, :2 * C].set(b1[0])
    vecs = vecs.at[6, :C].set(b2[0])

    x2d = x.reshape(Bsz * Tsz, C)                                          # fold batch into tokens

    kernel = functools.partial(fcblock_kernel, batch=Bsz, seq=Tsz, n_head=H)
    vmem = pl.BlockSpec(memory_space=pltpu.MemorySpace.VMEM)
    out2d = pl.pallas_call(
        kernel,
        out_shape=jax.ShapeDtypeStruct((Bsz * Tsz, C), x.dtype),
        in_specs=[vmem] * 4,
        out_specs=vmem,
    )(x2d, vecs, wA, w2b)
    return out2d.reshape(Bsz, Tsz, C)


def fcblock_reference(x, params):
    """Plain-JAX f32 reference (identical math, un-fused weights) for correctness."""
    (ln1g, ln1b, wq, wk, wv, wp, bp, ln2g, ln2b, w1, b1, w2, b2) = params
    h = _layer_norm(x, ln1g[0], ln1b[0])
    q, k, v = h @ wq, h @ wk, h @ wv
    qh = q.reshape(B, T, N_HEAD, HEAD_SIZE).transpose(0, 2, 1, 3)
    kh = k.reshape(B, T, N_HEAD, HEAD_SIZE).transpose(0, 2, 1, 3)
    vh = v.reshape(B, T, N_HEAD, HEAD_SIZE).transpose(0, 2, 1, 3)
    wei = jnp.einsum("bhqd,bhkd->bhqk", qh, kh) * HEAD_SIZE ** (-0.5)
    mask = jnp.tril(jnp.ones((T, T), bool))
    wei = jnp.where(mask, wei, -jnp.inf)
    p = jax.nn.softmax(wei, axis=-1)
    oh = jnp.einsum("bhqk,bhkd->bhqd", p, vh).transpose(0, 2, 1, 3).reshape(B, T, N_EMBD)
    x1 = x + (oh @ wp + bp[0])
    h2 = _layer_norm(x1, ln2g[0], ln2b[0])
    ff = jax.nn.sigmoid(h2 @ w1 + b1[0]) @ w2 + b2[0]
    return x1 + ff


def init_params(key):
    """Deterministic synthetic init: weights ~ N(0, 0.02), biases zero,
    LayerNorm gamma=1 beta=0 (PyTorch defaults).  Linear weights stored as
    (in, out) so the kernel computes y = x @ W (same semantics as x @ W_pt^T)."""
    ks = jax.random.split(key, 6)
    n = lambda k, shape: (0.02 * jax.random.normal(k, shape)).astype(jnp.float32)
    C = N_EMBD
    ln1g = jnp.ones((1, C), jnp.float32)
    ln1b = jnp.zeros((1, C), jnp.float32)
    ln2g = jnp.ones((1, C), jnp.float32)
    ln2b = jnp.zeros((1, C), jnp.float32)
    wq = n(ks[0], (C, C))        # per-head Q weights concatenated along out dim
    wk = n(ks[1], (C, C))
    wv = n(ks[2], (C, C))
    wp = n(ks[3], (C, C))        # MHA output projection (init_2: normal 0.02)
    bp = jnp.zeros((1, C), jnp.float32)
    w1 = n(ks[4], (C, 2 * C))    # FC: n_embd -> 2*n_embd
    b1 = jnp.zeros((1, 2 * C), jnp.float32)
    w2 = n(ks[5], (2 * C, C))    # FC: 2*n_embd -> n_embd
    b2 = jnp.zeros((1, C), jnp.float32)
    return (ln1g, ln1b, wq, wk, wv, wp, bp, ln2g, ln2b, w1, b1, w2, b2)


if __name__ == "__main__":
    key = jax.random.PRNGKey(0)
    kx, kp = jax.random.split(key)
    x = jax.random.normal(kx, (B, T, N_EMBD), dtype=jnp.float32)
    params = init_params(kp)

    out = jax.block_until_ready(fcblock_pallas(x, params))
    ref = jax.block_until_ready(fcblock_reference(x, params))

    assert out.shape == (B, T, N_EMBD)
    # tolerance covers bf16 MXU operands (f32 accumulation) + EUP approx reciprocal
    assert jnp.allclose(out, ref, atol=1e-2, rtol=1e-2), "mismatch vs JAX reference"
    print("KERNEL_OK")
</pallas_src>

<mosaic_0001>
module attributes {stable_mosaic.version = 11 : i64} {
  func.func @fcblock_kernel(%arg0: memref<32x64xf32, #tpu.memory_space<vmem>>, %arg1: memref<8x128xf32, #tpu.memory_space<vmem>>, %arg2: memref<64x448xbf16, #tpu.memory_space<vmem>>, %arg3: memref<128x64xbf16, #tpu.memory_space<vmem>>, %arg4: memref<32x64xf32, #tpu.memory_space<vmem>>) attributes {dimension_semantics = [], scalar_prefetch = 0 : i64, scratch_operands = 0 : i64, tpu.core_type = #tpu.core_type<tc>} {
    %c0 = arith.constant 0 : index
    %c0_0 = arith.constant 0 : index
    %0 = vector.load %arg0[%c0, %c0_0] : memref<32x64xf32, #tpu.memory_space<vmem>>, vector<32x64xf32>
    %c0_1 = arith.constant 0 : index
    %c0_2 = arith.constant 0 : index
    %1 = vector.load %arg1[%c0_1, %c0_2] : memref<8x128xf32, #tpu.memory_space<vmem>>, vector<1x64xf32>
    %c1 = arith.constant 1 : index
    %c0_3 = arith.constant 0 : index
    %2 = vector.load %arg1[%c1, %c0_3] : memref<8x128xf32, #tpu.memory_space<vmem>>, vector<1x64xf32>
    %c2 = arith.constant 2 : index
    %c0_4 = arith.constant 0 : index
    %3 = vector.load %arg1[%c2, %c0_4] : memref<8x128xf32, #tpu.memory_space<vmem>>, vector<1x64xf32>
    %c3 = arith.constant 3 : index
    %c0_5 = arith.constant 0 : index
    %4 = vector.load %arg1[%c3, %c0_5] : memref<8x128xf32, #tpu.memory_space<vmem>>, vector<1x64xf32>
    %c4 = arith.constant 4 : index
    %c0_6 = arith.constant 0 : index
    %5 = vector.load %arg1[%c4, %c0_6] : memref<8x128xf32, #tpu.memory_space<vmem>>, vector<1x64xf32>
    %c5 = arith.constant 5 : index
    %c0_7 = arith.constant 0 : index
    %6 = vector.load %arg1[%c5, %c0_7] : memref<8x128xf32, #tpu.memory_space<vmem>>, vector<1x128xf32>
    %c6 = arith.constant 6 : index
    %c0_8 = arith.constant 0 : index
    %7 = vector.load %arg1[%c6, %c0_8] : memref<8x128xf32, #tpu.memory_space<vmem>>, vector<1x64xf32>
    %c0_9 = arith.constant 0 : index
    %c0_10 = arith.constant 0 : index
    %8 = vector.load %arg2[%c0_9, %c0_10] : memref<64x448xbf16, #tpu.memory_space<vmem>>, vector<64x192xbf16>
    %c0_11 = arith.constant 0 : index
    %c256 = arith.constant 256 : index
    %9 = vector.load %arg2[%c0_11, %c256] : memref<64x448xbf16, #tpu.memory_space<vmem>>, vector<64x128xbf16>
    %c0_12 = arith.constant 0 : index
    %c384 = arith.constant 384 : index
    %10 = vector.load %arg2[%c0_12, %c384] : memref<64x448xbf16, #tpu.memory_space<vmem>>, vector<64x64xbf16>
    %cst = arith.constant dense<0.000000e+00> : vector<32xf32>
    %11 = vector.multi_reduction <add>, %0, %cst [1] : vector<32x64xf32> to vector<32xf32>
    %12 = vector.shape_cast %11 : vector<32xf32> to vector<32x1xf32>
    %cst_13 = arith.constant 6.400000e+01 : f32
    %13 = vector.broadcast %cst_13 : f32 to vector<32x1xf32>
    %14 = arith.divf %12, %13 : vector<32x1xf32>
    %15 = arith.mulf %0, %0 : vector<32x64xf32>
    %cst_14 = arith.constant dense<0.000000e+00> : vector<32xf32>
    %16 = vector.multi_reduction <add>, %15, %cst_14 [1] : vector<32x64xf32> to vector<32xf32>
    %17 = vector.shape_cast %16 : vector<32xf32> to vector<32x1xf32>
    %cst_15 = arith.constant 6.400000e+01 : f32
    %18 = vector.broadcast %cst_15 : f32 to vector<32x1xf32>
    %19 = arith.divf %17, %18 : vector<32x1xf32>
    %20 = arith.mulf %14, %14 : vector<32x1xf32>
    %21 = arith.subf %19, %20 : vector<32x1xf32>
    %22 = vector.broadcast %14 : vector<32x1xf32> to vector<32x64xf32>
    %23 = arith.subf %0, %22 : vector<32x64xf32>
    %cst_16 = arith.constant 9.99999974E-6 : f32
    %24 = vector.broadcast %cst_16 : f32 to vector<32x1xf32>
    %25 = arith.addf %21, %24 : vector<32x1xf32>
    %26 = math.rsqrt %25 : vector<32x1xf32>
    %27 = vector.broadcast %26 : vector<32x1xf32> to vector<32x64xf32>
    %28 = arith.mulf %23, %27 : vector<32x64xf32>
    %29 = vector.broadcast %1 : vector<1x64xf32> to vector<32x64xf32>
    %30 = arith.mulf %28, %29 : vector<32x64xf32>
    %31 = vector.broadcast %2 : vector<1x64xf32> to vector<32x64xf32>
    %32 = arith.addf %30, %31 : vector<32x64xf32>
    %33 = arith.truncf %32 : vector<32x64xf32> to vector<32x64xbf16>
    %cst_17 = arith.constant dense<0.000000e+00> : vector<32x192xf32>
    %34 = tpu.matmul %33, %8, %cst_17 {dimension_numbers = #tpu.dot_dimension_numbers<[1], [0], [0], [1], [0, 0, 1, 1], [], []>} : vector<32x64xbf16>, vector<64x192xbf16>, vector<32x192xf32> -> vector<32x192xf32>
    %35 = vector.extract_strided_slice %34 {offsets = [0, 0], sizes = [32, 48], strides = [1, 1]} : vector<32x192xf32> to vector<32x48xf32>
    %36 = vector.shape_cast %35 : vector<32x48xf32> to vector<2x16x48xf32>
    %37 = vector.extract_strided_slice %34 {offsets = [0, 48], sizes = [32, 48], strides = [1, 1]} : vector<32x192xf32> to vector<32x48xf32>
    %38 = vector.shape_cast %37 : vector<32x48xf32> to vector<2x16x48xf32>
    %39 = vector.extract_strided_slice %34 {offsets = [0, 96], sizes = [32, 48], strides = [1, 1]} : vector<32x192xf32> to vector<32x48xf32>
    %40 = vector.shape_cast %39 : vector<32x48xf32> to vector<2x16x48xf32>
    %41 = vector.extract_strided_slice %34 {offsets = [0, 144], sizes = [32, 48], strides = [1, 1]} : vector<32x192xf32> to vector<32x48xf32>
    %42 = vector.shape_cast %41 : vector<32x48xf32> to vector<2x16x48xf32>
    %43 = tpu.concatenate %36, %38, %40, %42 in 0 : vector<2x16x48xf32>, vector<2x16x48xf32>, vector<2x16x48xf32>, vector<2x16x48xf32> -> vector<8x16x48xf32>
    %44 = vector.extract_strided_slice %43 {offsets = [0, 0, 0], sizes = [8, 16, 16], strides = [1, 1, 1]} : vector<8x16x48xf32> to vector<8x16x16xf32>
    %45 = vector.extract_strided_slice %43 {offsets = [0, 0, 16], sizes = [8, 16, 16], strides = [1, 1, 1]} : vector<8x16x48xf32> to vector<8x16x16xf32>
    %46 = vector.extract_strided_slice %43 {offsets = [0, 0, 32], sizes = [8, 16, 16], strides = [1, 1, 1]} : vector<8x16x48xf32> to vector<8x16x16xf32>
    %47 = tpu.iota {dimensions = array<i32: 1>} : vector<1x16x16xi32>
    %48 = tpu.iota {dimensions = array<i32: 2>} : vector<1x16x16xi32>
    %49 = arith.cmpi sge, %47, %48 : vector<1x16x16xi32>
    %cst_18 = arith.constant 0.000000e+00 : f32
    %cst_19 = arith.constant -1.000000e+30 : f32
    %50 = vector.broadcast %cst_18 : f32 to vector<1x16x16xf32>
    %51 = vector.broadcast %cst_19 : f32 to vector<1x16x16xf32>
    %52 = arith.select %49, %50, %51 : vector<1x16x16xi1>, vector<1x16x16xf32>
    %53 = arith.truncf %44 : vector<8x16x16xf32> to vector<8x16x16xbf16>
    %54 = arith.truncf %45 : vector<8x16x16xf32> to vector<8x16x16xbf16>
    "tpu.trace_start"() <{level = 10 : i32, message = "bqd,bkd->bqk"}> : () -> ()
    %cst_20 = arith.constant dense<0.000000e+00> : vector<8x16x16xf32>
    %55 = tpu.matmul %53, %54, %cst_20 {dimension_numbers = #tpu.dot_dimension_numbers<[2], [2], [1], [1], [0, 0, 0, 1, 1, 1], [0], [0]>} : vector<8x16x16xbf16>, vector<8x16x16xbf16>, vector<8x16x16xf32> -> vector<8x16x16xf32>
    "tpu.trace_stop"() : () -> ()
    %56 = vector.broadcast %52 : vector<1x16x16xf32> to vector<8x16x16xf32>
    %57 = arith.addf %55, %56 : vector<8x16x16xf32>
    %cst_21 = arith.constant dense<0xFF800000> : vector<8x16xf32>
    %58 = vector.multi_reduction <maximumf>, %57, %cst_21 [2] : vector<8x16x16xf32> to vector<8x16xf32>
    %59 = vector.shape_cast %58 : vector<8x16xf32> to vector<8x16x1xf32>
    %60 = vector.broadcast %59 : vector<8x16x1xf32> to vector<8x16x16xf32>
    %61 = arith.subf %57, %60 : vector<8x16x16xf32>
    %62 = math.exp %61 : vector<8x16x16xf32>
    %cst_22 = arith.constant dense<0.000000e+00> : vector<8x16xf32>
    %63 = vector.multi_reduction <add>, %62, %cst_22 [2] : vector<8x16x16xf32> to vector<8x16xf32>
    %64 = vector.shape_cast %63 : vector<8x16xf32> to vector<8x16x1xf32>
    %65 = tpu.reciprocal %64 {approx = true} : vector<8x16x1xf32> -> vector<8x16x1xf32>
    %66 = vector.broadcast %65 : vector<8x16x1xf32> to vector<8x16x16xf32>
    %67 = arith.mulf %62, %66 : vector<8x16x16xf32>
    %68 = arith.truncf %67 : vector<8x16x16xf32> to vector<8x16x16xbf16>
    %69 = arith.truncf %46 : vector<8x16x16xf32> to vector<8x16x16xbf16>
    "tpu.trace_start"() <{level = 10 : i32, message = "bqk,bkd->bqd"}> : () -> ()
    %cst_23 = arith.constant dense<0.000000e+00> : vector<8x16x16xf32>
    %70 = tpu.matmul %68, %69, %cst_23 {dimension_numbers = #tpu.dot_dimension_numbers<[2], [1], [1], [2], [0, 0, 0, 1, 1, 2], [0], [0]>} : vector<8x16x16xbf16>, vector<8x16x16xbf16>, vector<8x16x16xf32> -> vector<8x16x16xf32>
    "tpu.trace_stop"() : () -> ()
    %71 = vector.extract_strided_slice %70 {offsets = [0, 0, 0], sizes = [2, 16, 16], strides = [1, 1, 1]} : vector<8x16x16xf32> to vector<2x16x16xf32>
    %72 = vector.shape_cast %71 : vector<2x16x16xf32> to vector<32x16xf32>
    %73 = vector.extract_strided_slice %70 {offsets = [2, 0, 0], sizes = [2, 16, 16], strides = [1, 1, 1]} : vector<8x16x16xf32> to vector<2x16x16xf32>
    %74 = vector.shape_cast %73 : vector<2x16x16xf32> to vector<32x16xf32>
    %75 = vector.extract_strided_slice %70 {offsets = [4, 0, 0], sizes = [2, 16, 16], strides = [1, 1, 1]} : vector<8x16x16xf32> to vector<2x16x16xf32>
    %76 = vector.shape_cast %75 : vector<2x16x16xf32> to vector<32x16xf32>
    %77 = vector.extract_strided_slice %70 {offsets = [6, 0, 0], sizes = [2, 16, 16], strides = [1, 1, 1]} : vector<8x16x16xf32> to vector<2x16x16xf32>
    %78 = vector.shape_cast %77 : vector<2x16x16xf32> to vector<32x16xf32>
    %79 = tpu.concatenate %72, %74, %76, %78 in 1 : vector<32x16xf32>, vector<32x16xf32>, vector<32x16xf32>, vector<32x16xf32> -> vector<32x64xf32>
    %80 = vector.broadcast %5 : vector<1x64xf32> to vector<32x64xf32>
    %81 = arith.addf %0, %80 : vector<32x64xf32>
    %82 = arith.truncf %79 : vector<32x64xf32> to vector<32x64xbf16>
    %cst_24 = arith.constant dense<0.000000e+00> : vector<32x64xf32>
    %83 = tpu.matmul %82, %10, %cst_24 {dimension_numbers = #tpu.dot_dimension_numbers<[1], [0], [0], [1], [0, 0, 1, 1], [], []>} : vector<32x64xbf16>, vector<64x64xbf16>, vector<32x64xf32> -> vector<32x64xf32>
    %84 = arith.addf %81, %83 : vector<32x64xf32>
    %cst_25 = arith.constant dense<0.000000e+00> : vector<32xf32>
    %85 = vector.multi_reduction <add>, %84, %cst_25 [1] : vector<32x64xf32> to vector<32xf32>
    %86 = vector.shape_cast %85 : vector<32xf32> to vector<32x1xf32>
    %cst_26 = arith.constant 6.400000e+01 : f32
    %87 = vector.broadcast %cst_26 : f32 to vector<32x1xf32>
    %88 = arith.divf %86, %87 : vector<32x1xf32>
    %89 = arith.mulf %84, %84 : vector<32x64xf32>
    %cst_27 = arith.constant dense<0.000000e+00> : vector<32xf32>
    %90 = vector.multi_reduction <add>, %89, %cst_27 [1] : vector<32x64xf32> to vector<32xf32>
    %91 = vector.shape_cast %90 : vector<32xf32> to vector<32x1xf32>
    %cst_28 = arith.constant 6.400000e+01 : f32
    %92 = vector.broadcast %cst_28 : f32 to vector<32x1xf32>
    %93 = arith.divf %91, %92 : vector<32x1xf32>
    %94 = arith.mulf %88, %88 : vector<32x1xf32>
    %95 = arith.subf %93, %94 : vector<32x1xf32>
    %96 = vector.broadcast %88 : vector<32x1xf32> to vector<32x64xf32>
    %97 = arith.subf %84, %96 : vector<32x64xf32>
    %cst_29 = arith.constant 9.99999974E-6 : f32
    %98 = vector.broadcast %cst_29 : f32 to vector<32x1xf32>
    %99 = arith.addf %95, %98 : vector<32x1xf32>
    %100 = math.rsqrt %99 : vector<32x1xf32>
    %101 = vector.broadcast %100 : vector<32x1xf32> to vector<32x64xf32>
    %102 = arith.mulf %97, %101 : vector<32x64xf32>
    %103 = vector.broadcast %3 : vector<1x64xf32> to vector<32x64xf32>
    %104 = arith.mulf %102, %103 : vector<32x64xf32>
    %105 = vector.broadcast %4 : vector<1x64xf32> to vector<32x64xf32>
    %106 = arith.addf %104, %105 : vector<32x64xf32>
    %107 = arith.truncf %106 : vector<32x64xf32> to vector<32x64xbf16>
    %cst_30 = arith.constant dense<0.000000e+00> : vector<32x128xf32>
    %108 = tpu.matmul %107, %9, %cst_30 {dimension_numbers = #tpu.dot_dimension_numbers<[1], [0], [0], [1], [0, 0, 1, 1], [], []>} : vector<32x64xbf16>, vector<64x128xbf16>, vector<32x128xf32> -> vector<32x128xf32>
    %109 = vector.broadcast %6 : vector<1x128xf32> to vector<32x128xf32>
    %110 = arith.addf %108, %109 : vector<32x128xf32>
    %111 = arith.negf %110 : vector<32x128xf32>
    %112 = math.exp %111 : vector<32x128xf32>
    %cst_31 = arith.constant 1.000000e+00 : f32
    %113 = vector.broadcast %cst_31 : f32 to vector<32x128xf32>
    %114 = arith.addf %113, %112 : vector<32x128xf32>
    %115 = arith.divf %113, %114 : vector<32x128xf32>
    %116 = arith.truncf %115 : vector<32x128xf32> to vector<32x128xbf16>
    %c0_32 = arith.constant 0 : index
    %c0_33 = arith.constant 0 : index
    %117 = vector.load %arg3[%c0_32, %c0_33] : memref<128x64xbf16, #tpu.memory_space<vmem>>, vector<128x64xbf16>
    %cst_34 = arith.constant dense<0.000000e+00> : vector<32x64xf32>
    %118 = tpu.matmul %116, %117, %cst_34 {dimension_numbers = #tpu.dot_dimension_numbers<[1], [0], [0], [1], [0, 0, 1, 1], [], []>} : vector<32x128xbf16>, vector<128x64xbf16>, vector<32x64xf32> -> vector<32x64xf32>
    %119 = vector.broadcast %7 : vector<1x64xf32> to vector<32x64xf32>
    %120 = arith.addf %118, %119 : vector<32x64xf32>
    %121 = arith.addf %84, %120 : vector<32x64xf32>
    %c0_35 = arith.constant 0 : index
    %c0_36 = arith.constant 0 : index
    %122 = vector.load %arg4[%c0_35, %c0_36] : memref<32x64xf32, #tpu.memory_space<vmem>>, vector<32x64xf32>
    tpu.vector_store %arg4[%c0_35, %c0_36], %121 {strides = array<i32>} : memref<32x64xf32, #tpu.memory_space<vmem>>, vector<32x64xf32>,
    return
  }
}

</mosaic_0001>

<bundles_post_ra>
// kernel: tpu_custom_call.1
= control target key start
LH: loop header
LB: loop body
LE: loop exit
PB: predicated region body
PF: predicated region fallthrough
CT: control target
= control target key end

     0   :  { %9 = vsyncpa [#allocation3], 0  ;;  %s2816_s0 = inlined_call_operand.vmem [shape: f32[32,64], index: 0, kind: input, shape index: {}]   ;;  %s2817_s1 = inlined_call_operand.vmem [shape: f32[8,128], index: 1, kind: input, shape index: {}]   ;;  %s2818_s2 = inlined_call_operand.hbm [shape: bf16[64,448], index: 2, kind: input, shape index: {}]   ;;  %s2819_s3 = inlined_call_operand.vmem [shape: bf16[128,64], index: 3, kind: input, shape index: {}]   ;;  %s2820_s4 = inlined_call_operand.hbm [shape: f32[32,64], index: 4, kind: output, shape index: {}]  }
   0x1   :  { %10 = vsyncpa [#allocation4], 0  ;;  %s2273_s15 = smov [#allocation2]  }
   0x2   :  { %s20_s16 = sshll.u32 %s2273_s15, 4  ;;  %s21_s16 = int_to_ptr.vmem [resolvable:$true] %s20_s16 }
   0x3   :  { %s2237_s17 = scalar_lea.vmem %s21_s16, 2048  ;;  %p2242_p1 = scmp.lt.s32.totalorder %s21_s16, %s21_s16 }
   0x4   :  { %p2238_p0 = scmp.ne.s32.totalorder %s21_s16, %s2237_s17  ;;  %p2243_p2 = scmp.lt.s32.totalorder %s2237_s17, %s2237_s17 }
   0x6   :  { %p2244_p3 = por %p2243_p2, %p2242_p1 }
   0x8   :  { %p2245_p4 = pnand %p2244_p3, %p2238_p0 }
   0xa   :  { %2248 = shalt.err (!%p2245_p4)
}
   0xb   :  { %s2274_s18 = smov 256   ;;  %s2275_s19 = smov 16  }
   0xc   :  { %26 = dma.hbm_to_vmem [thread:$0]  %s2818_s2, 2048, %s21_s16, [#allocation3], %s2274_s18, %s2274_s18, %s2275_s19  }
   0xd   :  { %2269 = dma.done.wait [#allocation3], 2048  }
   0xe   :  { %2270 = vsyncadd [#allocation3], 4294965248  ;;  %vm68_vm0 = vcmask 523264   ;;  %v2320_v0 = vld [vmem:[%s2816_s0] sm:$0xff]  ;;  %v2325_v1 = vld [vmem:[%s2816_s0 + $0x8] sm:$0xff]  ;;  %v2276_v22 = vmov 0  }
   0xf   :  { %v2330_v2 = vld [vmem:[%s2816_s0 + $0x10] sm:$0xff]  ;;  %v69_v3 = vsel %vm68_vm0, %v2320_v0, 0.0  ;;  %v86_v4 = vmul.f32 %v2320_v0, %v2320_v0  ;;  %v87_v5 = vmul.f32 %v2325_v1, %v2325_v1  ;;  %v2341_v6 = vld [vmem:[%s2816_s0 + $0x18] sm:$0xff]  ;;  %v72_v7 = vsel %vm68_vm0, %v2325_v1, 0.0  ;;  %226 = vmatprep.mubr.bf16.mxu0 %v2276_v22  ;;  %v1765_v56 = vld [vmem:[%s2817_s1] ss:$0 sm:$0xff] }
  0x10   :  { %70 = vadd.xlane.f32.xlu0 %v69_v3  ;;  %v75_v8 = vsel %vm68_vm0, %v2330_v2, 0.0  ;;  %v88_v9 = vmul.f32 %v2330_v2, %v2330_v2  ;;  %v89_v10 = vmul.f32 %v2341_v6, %v2341_v6  ;;  %v78_v13 = vsel %vm68_vm0, %v2341_v6, 0.0  ;;  %v2101_v16 = vld [vmem:[#allocation2 + $0x64] ss:$16 sps:$4 sm:$0xff]   ;;  %v2103_v17 = vld [vmem:[#allocation2 + $0x60] ss:$16 sps:$4 sm:$0xff]  }
  0x11   :  { %v90_v11 = vsel %vm68_vm0, %v86_v4, 0.0  ;;  %v93_v12 = vsel %vm68_vm0, %v87_v5, 0.0  ;;  %202 = vmatprep.subr.bf16.mxu0 %v2101_v16  ;;  %v2104_v18 = vld [vmem:[#allocation2 + $0x44] ss:$16 sps:$4 sm:$0xff]   ;;  %v2106_v19 = vld [vmem:[#allocation2 + $0x40] ss:$16 sps:$4 sm:$0xff]  }
  0x12   :  { %91 = vadd.xlane.f32.xlu1 %v90_v11  ;;  %v96_v14 = vsel %vm68_vm0, %v88_v9, 0.0  ;;  %v99_v15 = vsel %vm68_vm0, %v89_v10, 0.0  ;;  %203 = vmatpush1.bf16.msra.mxu0 %v2103_v17  ;;  %v2107_v20 = vld [vmem:[#allocation2 + $0x24] ss:$16 sps:$4 sm:$0xff]   ;;  %v2109_v21 = vld [vmem:[#allocation2 + $0x20] ss:$16 sps:$4 sm:$0xff]  }
  0x13   :  { %204 = vmatprep.subr.bf16.mxu0 %v2104_v18  ;;  %v2110_v23 = vld [vmem:[#allocation2 + $0x4] ss:$16 sps:$4 sm:$0xff]   ;;  %v2112_v24 = vld [vmem:[#allocation2] ss:$16 sps:$4 sm:$0xff]   ;;  %s2277_s7 = smov 32   ;;  %s2278_s8 = smov 80  }
  0x14   :  { %73 = vadd.xlane.f32.xlu0 %v72_v7  ;;  %v1766_v61 = vld [vmem:[%s2817_s1 + $0x1] ss:$0 sm:$0xff]  ;;  %vm2280_vm1 = vmmov 0   ;;  %s2281_s9 = smov 112   ;;  %vm283_vm2 = vcmask 261120   ;;  %vm324_vm3 = vcmask 130048  }
  0x15   :  { %s2283_s10 = smov 96   ;;  %s2284_s11 = smov 48   ;;  %vm1338_vm6 = vcmask 392192  }
  0x16   :  { %94 = vadd.xlane.f32.xlu1 %v93_v12  ;;  %205 = vmatpush1.bf16.msra.mxu0 %v2106_v19  ;;  %s2285_s17 = smov [#allocation5]  }
  0x17   :  { %206 = vmatprep.subr.bf16.mxu0 %v2107_v20  ;;  %v2279_v20 = vmov 0.0   ;;  %s1753_s18 = sshll.u32 %s2285_s17, 4  ;;  %s1754_s18 = int_to_ptr.vmem [resolvable:$true] %s1753_s18 }
  0x18   :  { %76 = vadd.xlane.f32.xlu0 %v75_v8  ;;  %1882 = vmatprep.subr.bf16.mxu1 %v2279_v20  ;;  %p2254_p6 = scmp.lt.s32.totalorder %s1754_s18, %s1754_s18 }
  0x19   :  { %1884 = vmatprep.mubr.msk.bf16.mxu1 %vm2280_vm1, %v2279_v20 }
  0x1a   :  { %79 = vadd.xlane.f32.xlu1 %v78_v13  ;;  %207 = vmatpush1.bf16.msra.mxu0 %v2109_v21 }
  0x1b   :  { %208 = vmatprep.subr.bf16.mxu0 %v2110_v23 }
  0x1c   :  { %97 = vadd.xlane.f32.xlu0 %v96_v14 }
  0x1e   :  { %100 = vadd.xlane.f32.xlu1 %v99_v15  ;;  %209 = vmatpush1.bf16.msra.mxu0 %v2112_v24 }
  0x1f   :  { %1876 = vmatprep.subr.bf16.mxu0 %v2279_v20 }
  0x99   :  { %v71_v25 = vpop.xlane.xlu0 %70 }
  0x9a   :  { %v82_v26 = vmul.f32 0.015625, %v71_v25 }
  0x9b   :  { %v92_v27 = vpop.xlane.xlu1 %91 }
  0x9c   :  { %v106_v28 = vmul.f32 %v82_v26, %v82_v26  ;;  %v102_v29 = vmul.f32 0.015625, %v92_v27  ;;  %v114_v53 = vsub.f32 %v2320_v0, %v82_v26 }
  0x9d   :  { %v74_v30 = vpop.xlane.xlu0 %73 }
  0x9e   :  { %v110_v31 = vsub.f32 %v102_v29, %v106_v28  ;;  %v83_v32 = vmul.f32 0.015625, %v74_v30 }
  0x9f   :  { %v95_v33 = vpop.xlane.xlu1 %94 }
  0xa0   :  { %v118_v34 = vadd.f32 1e-05, %v110_v31  ;;  %v107_v35 = vmul.f32 %v83_v32, %v83_v32  ;;  %v103_v36 = vmul.f32 0.015625, %v95_v33  ;;  %v115_v57 = vsub.f32 %v2325_v1, %v83_v32 }
  0xa1   :  { %v77_v37 = vpop.xlane.xlu0 %76 }
  0xa2   :  { %2129 = vrsqrt.f32 %v118_v34  ;;  %v111_v38 = vsub.f32 %v103_v36, %v107_v35  ;;  %v84_v39 = vmul.f32 0.015625, %v77_v37 }
  0xa3   :  { %v80_v40 = vpop.xlane.xlu1 %79 }
  0xa4   :  { %v119_v41 = vadd.f32 1e-05, %v111_v38  ;;  %v108_v42 = vmul.f32 %v84_v39, %v84_v39  ;;  %v85_v43 = vmul.f32 0.015625, %v80_v40  ;;  %v116_v63 = vsub.f32 %v2330_v2, %v84_v39 }
  0xa5   :  { %v98_v44 = vpop.xlane.xlu0 %97 }
  0xa6   :  { %2131 = vrsqrt.f32 %v119_v41  ;;  %v104_v45 = vmul.f32 0.015625, %v98_v44  ;;  %v109_v47 = vmul.f32 %v85_v43, %v85_v43  ;;  %v117_v5 = vsub.f32 %v2341_v6, %v85_v43 }
  0xa7   :  { %v101_v46 = vpop.xlane.xlu1 %100 }
  0xa8   :  { %v112_v48 = vsub.f32 %v104_v45, %v108_v42  ;;  %v105_v49 = vmul.f32 0.015625, %v101_v46 }
  0xaa   :  { %v120_v50 = vadd.f32 1e-05, %v112_v48  ;;  %v113_v51 = vsub.f32 %v105_v49, %v109_v47 }
  0xac   :  { %2133 = vrsqrt.f32 %v120_v50  ;;  %v121_v52 = vadd.f32 1e-05, %v113_v51 }
  0xae   :  { %2135 = vrsqrt.f32 %v121_v52 }
  0xaf   :  { %v2130_v54 = vpop.eup %2129 }
  0xb0   :  { %v126_v55 = vmul.f32 %v2130_v54, %v114_v53 }
  0xb2   :  { %v134_v60 = vmul.f32 %v1765_v56, %v126_v55 }
  0xb3   :  { %v2132_v58 = vpop.eup %2131 }
  0xb4   :  { %v127_v59 = vmul.f32 %v2132_v58, %v115_v57  ;;  %v142_v0 = vadd.f32 %v1766_v61, %v134_v60 }
  0xb6   :  { %v135_v62 = vmul.f32 %v1765_v56, %v127_v59 }
  0xb8   :  { %v143_v3 = vadd.f32 %v1766_v61, %v135_v62 }
  0xb9   :  { %v2134_v4 = vpop.eup %2133 }
  0xba   :  { %v146_v7 = vpack.c.bf16 %v143_v3, %v142_v0  ;;  %v128_v8 = vmul.f32 %v2134_v4, %v116_v63 }
  0xbb   :  { %v2136_v9 = vpop.eup %2135 }
  0xbc   :  { %1775 = vmatmul.mubr.msk.bf16.vlgmr.msra.gmra.mxu0 %vm68_vm0, %v146_v7  ;;  %v129_v1 = vmul.f32 %v2136_v9, %v117_v5  ;;  %v136_v10 = vmul.f32 %v1765_v56, %v128_v8 }
  0xbd   :  { %236 = vmatprep.mubr.bf16.mxu0 %v2276_v22 }
  0xbe   :  { %v137_v11 = vmul.f32 %v1765_v56, %v129_v1  ;;  %v144_v12 = vadd.f32 %v1766_v61, %v136_v10 }
  0xc0   :  { %v145_v13 = vadd.f32 %v1766_v61, %v137_v11 }
  0xc2   :  { %v147_v14 = vpack.c.bf16 %v145_v13, %v144_v12 }
  0xc4   :  { %1776 = vmatmul.mubr.msk.bf16.gmra.mxu0 %vm68_vm0, %v147_v14 }
  0xc5   :  { %1878 = vmatprep.mubr.msk.bf16.mxu0 %vm2280_vm1, %v2279_v20 }
 0x17c   :  { %v228_v2 = vpop.f32.mrf.mxu0 }
 0x17e   :  { %v230_v15 = vpop.f32.mrf.mxu0 }
 0x17f   :  { %v2036_v16 = vpack.i.bf16 %v230_v15, %v228_v2 }
 0x180   :  { %v232_v17 = vpop.f32.mrf.mxu0 }
 0x181   :  { %v2031_v18 = vpack.i.bf16 %v232_v17, %v228_v2  ;;  %2037 = vrot.lane.b32.xlu1 %v2036_v16, %s2277_s7  ;;  %v2378_v28 = vpack.c.bf16 %v232_v17, %v228_v2 }
 0x182   :  { %v234_v6 = vpop.f32.mrf.mxu0 }
 0x183   :  { %2032 = vrot.lane.b32.xlu0 %v2031_v18, %s2278_s8  ;;  %v2061_v25 = vpack.i.bf16 %v234_v6, %v230_v15  ;;  %v2046_v26 = vpack.i.bf16 %v234_v6, %v232_v17  ;;  %v304_v6 = vlaneseq }
 0x184   :  { %v238_v19 = vpop.f32.mrf.mxu0 }
 0x186   :  { %v240_v21 = vpop.f32.mrf.mxu0 }
 0x187   :  { %v2051_v22 = vpack.i.bf16 %v240_v21, %v238_v19 }
 0x188   :  { %v242_v23 = vpop.f32.mrf.mxu0 }
 0x189   :  { %v2041_v24 = vpack.i.bf16 %v242_v23, %v238_v19  ;;  %2052 = vrot.lane.b32.xlu0 %v2051_v22, %s2277_s7  ;;  %v2385_v31 = vpack.c.bf16 %v242_v23, %v238_v19  ;;  %v305_v19 = vshrl.u32 %v304_v6, 7 }
 0x18a   :  { %v244_v27 = vpop.f32.mrf.mxu0 }
 0x18b   :  { %2042 = vrot.lane.b32.xlu1 %v2041_v24, %s2278_s8  ;;  %v2056_v29 = vpack.i.bf16 %v244_v27, %v242_v23  ;;  %v2066_v30 = vpack.i.bf16 %v244_v27, %v240_v21  ;;  %v308_v21 = vand.u32 127, %v304_v6  ;;  %v306_v22 = vadd.s32 8, %v305_v19 }
 0x18c   :  { %v2282_v23 = vmov -1e+30  }
 0x18d   :  { %2062 = vrot.lane.b32.xlu0 %v2061_v25, %s2281_s9  ;;  %vm309_vm4 = vcmp.ge.s32.totalorder %v305_v19, %v308_v21  ;;  %vm310_vm5 = vcmp.ge.s32.totalorder %v306_v22, %v308_v21 }
 0x18e   :  { %v2465_v24 = vsel %vm309_vm4, 0.0, %v2282_v23 }
 0x18f   :  { %2047 = vrot.lane.b32.xlu1 %v2046_v26, %s2277_s7 }
 0x191   :  { %322 = vrot.lane.b32.xlu0 %v2378_v28, %s2281_s9 }
 0x193   :  { %2057 = vrot.lane.b32.xlu1 %v2056_v29, %s2277_s7  ;;  %v2470_v29 = vsel %vm310_vm5, 0.0, %v2282_v23 }
 0x197   :  { %2067 = vrot.lane.b32.xlu1 %v2066_v30, %s2281_s9 }
 0x19b   :  { %373 = vrot.lane.b32.xlu1 %v2385_v31, %s2281_s9 }
 0x1f3   :  { %v2038_v36 = vpop.permute.xlu1 %2037 }
 0x1f4   :  { %v2040_v41 = vunpack.i.h.bf16 %v2038_v36  ;;  %v2039_v42 = vunpack.i.l.bf16 %v2038_v36 }
 0x1f5   :  { %v2033_v32 = vpop.permute.xlu0 %2032 }
 0x1f6   :  { %v2035_v33 = vunpack.i.h.bf16 %v2033_v32  ;;  %v2034_v34 = vunpack.i.l.bf16 %v2033_v32  ;;  %v284_v49 = vsel %vm283_vm2, %v2039_v42, %v2040_v41 }
 0x1f8   :  { %v2389_v35 = vpack.c.bf16 %v2035_v33, %v2034_v34 }
 0x1fa   :  { %423 = vrot.lane.b32.xlu0 %v2389_v35, %s2281_s9 }
 0x1fb   :  { %v2053_v37 = vpop.permute.xlu0 %2052 }
 0x1fc   :  { %v2055_v50 = vunpack.i.h.bf16 %v2053_v37  ;;  %v2054_v51 = vunpack.i.l.bf16 %v2053_v37 }
 0x1fd   :  { %v2043_v38 = vpop.permute.xlu1 %2042 }
 0x1fe   :  { %v2045_v39 = vunpack.i.h.bf16 %v2043_v38  ;;  %v2044_v40 = vunpack.i.l.bf16 %v2043_v38  ;;  %v286_v60 = vsel %vm283_vm2, %v2054_v51, %v2055_v50 }
 0x1ff   :  { %v2063_v43 = vpop.permute.xlu0 %2062 }
 0x200   :  { %v2393_v44 = vpack.c.bf16 %v2045_v39, %v2044_v40  ;;  %v2065_v54 = vunpack.i.h.bf16 %v2063_v43  ;;  %v2064_v55 = vunpack.i.l.bf16 %v2063_v43 }
 0x201   :  { %v2048_v45 = vpop.permute.xlu1 %2047 }
 0x202   :  { %v2050_v46 = vunpack.i.h.bf16 %v2048_v45  ;;  %v2049_v47 = vunpack.i.l.bf16 %v2048_v45  ;;  %473 = vrot.lane.b32.xlu1 %v2393_v44, %s2281_s9  ;;  %v2407_v62 = vpack.c.bf16 %v2065_v54, %v2064_v55 }
 0x203   :  { %v323_v48 = vpop.permute.xlu0 %322 }
 0x204   :  { %v329_v52 = vsel %vm324_vm3, %v323_v48, 0  ;;  %v285_v53 = vsel %vm283_vm2, %v2049_v47, %v2050_v46 }
 0x205   :  { %v2058_v56 = vpop.permute.xlu1 %2057  ;;  %1877 = vmatpush3.bf16.xpose.msra.mxu0 %v329_v52  ;;  %v2400_v57 = vpack.c.bf16 %v285_v53, %v284_v49 }
 0x206   :  { %v2060_v58 = vunpack.i.h.bf16 %v2058_v56  ;;  %v2059_v59 = vunpack.i.l.bf16 %v2058_v56  ;;  %1894 = vmatprep.subr.bf16.mxu0 %v2279_v20 }
 0x207   :  { %523 = vrot.lane.b32.xlu0 %v2400_v57, %s2281_s9 }
 0x208   :  { %v287_v61 = vsel %vm283_vm2, %v2059_v59, %v2060_v58 }
 0x209   :  { %v2068_v63 = vpop.permute.xlu1 %2067  ;;  %v2409_v0 = vpack.c.bf16 %v287_v61, %v286_v60 }
 0x20a   :  { %v2070_v3 = vunpack.i.h.bf16 %v2068_v63  ;;  %v2069_v4 = vunpack.i.l.bf16 %v2068_v63 }
 0x20b   :  { %573 = vrot.lane.b32.xlu1 %v2409_v0, %s2281_s9  ;;  %623 = vrot.lane.b32.xlu0 %v2407_v62, %s2281_s9 }
 0x20c   :  { %v2415_v5 = vpack.c.bf16 %v2070_v3, %v2069_v4  ;;  %1879 = vmatmul.mubr.msk.bf16.vlgmr.msra.gmra.mxu0 %vm324_vm3, %v2378_v28 }
 0x20d   :  { %v374_v7 = vpop.permute.xlu1 %373  ;;  %1896 = vmatprep.mubr.msk.bf16.mxu0 %vm2280_vm1, %v2279_v20 }
 0x20e   :  { %v379_v8 = vsel %vm324_vm3, %v374_v7, 0 }
 0x20f   :  { %1883 = vmatpush3.bf16.xpose.msra.mxu1 %v379_v8  ;;  %673 = vrot.lane.b32.xlu1 %v2415_v5, %s2281_s9 }
 0x210   :  { %1888 = vmatprep.subr.bf16.mxu1 %v2279_v20 }
 0x216   :  { %1885 = vmatmul.mubr.msk.bf16.vlgmr.msra.gmra.mxu1 %vm324_vm3, %v2385_v31 }
 0x217   :  { %1890 = vmatprep.mubr.msk.bf16.mxu1 %vm2280_vm1, %v2279_v20 }
 0x26c   :  { %v424_v9 = vpop.permute.xlu0 %423 }
 0x26d   :  { %v429_v1 = vsel %vm324_vm3, %v424_v9, 0 }
 0x26e   :  { %1889 = vmatpush3.bf16.xpose.msra.mxu1 %v429_v1 }
 0x26f   :  { %1900 = vmatprep.subr.bf16.mxu1 %v2279_v20 }
 0x274   :  { %v474_v10 = vpop.permute.xlu1 %473 }
 0x275   :  { %v479_v11 = vsel %vm324_vm3, %v474_v10, 0  ;;  %1891 = vmatmul.mubr.msk.bf16.vlgmr.msra.gmra.mxu1 %vm324_vm3, %v2389_v35 }
 0x276   :  { %1895 = vmatpush3.bf16.xpose.msra.mxu0 %v479_v11  ;;  %1902 = vmatprep.mubr.msk.bf16.mxu1 %vm2280_vm1, %v2279_v20 }
 0x277   :  { %1906 = vmatprep.subr.bf16.mxu0 %v2279_v20 }
 0x279   :  { %v524_v12 = vpop.permute.xlu0 %523 }
 0x27a   :  { %v529_v13 = vsel %vm324_vm3, %v524_v12, 0 }
 0x27b   :  { %1901 = vmatpush3.bf16.xpose.msra.mxu1 %v529_v13 }
 0x27c   :  { %1912 = vmatprep.subr.bf16.mxu1 %v2279_v20 }
 0x27d   :  { %1897 = vmatmul.mubr.msk.bf16.vlgmr.msra.gmra.mxu0 %vm324_vm3, %v2393_v44  ;;  %v574_v14 = vpop.permute.xlu1 %573  ;;  %v624_v15 = vpop.permute.xlu0 %623 }
 0x27e   :  { %v579_v2 = vsel %vm324_vm3, %v574_v14, 0  ;;  %1908 = vmatprep.mubr.msk.bf16.mxu0 %vm2280_vm1, %v2279_v20  ;;  %v629_v16 = vsel %vm324_vm3, %v624_v15, 0 }
 0x27f   :  { %1907 = vmatpush3.bf16.xpose.msra.mxu0 %v579_v2 }
 0x280   :  { %1918 = vmatprep.subr.bf16.mxu0 %v2279_v20 }
 0x281   :  { %v674_v17 = vpop.permute.xlu1 %673 }
 0x282   :  { %1903 = vmatmul.mubr.msk.bf16.vlgmr.msra.gmra.mxu1 %vm324_vm3, %v2400_v57  ;;  %v679_v18 = vsel %vm324_vm3, %v674_v17, 0 }
 0x283   :  { %1913 = vmatpush3.bf16.xpose.msra.mxu1 %v629_v16  ;;  %1914 = vmatprep.mubr.msk.bf16.mxu1 %vm2280_vm1, %v2279_v20 }
 0x284   :  { %1924 = vmatprep.subr.bf16.mxu1 %v2279_v20 }
 0x286   :  { %1909 = vmatmul.mubr.msk.bf16.vlgmr.msra.gmra.mxu0 %vm324_vm3, %v2409_v0 }
 0x287   :  { %1919 = vmatpush3.bf16.xpose.msra.mxu0 %v679_v18  ;;  %1920 = vmatprep.mubr.msk.bf16.mxu0 %vm2280_vm1, %v2279_v20 }
 0x288   :  { %1930 = vmatprep.subr.bf16.mxu0 %v2279_v20 }
 0x28a   :  { %1915 = vmatmul.mubr.msk.bf16.vlgmr.msra.gmra.mxu1 %vm324_vm3, %v2407_v62 }
 0x28b   :  { %1926 = vmatprep.mubr.msk.bf16.mxu1 %vm2280_vm1, %v2279_v20 }
 0x28e   :  { %1921 = vmatmul.mubr.msk.bf16.vlgmr.msra.gmra.mxu0 %vm324_vm3, %v2415_v5 }
 0x28f   :  { %1932 = vmatprep.mubr.msk.bf16.mxu0 %vm2280_vm1, %v2279_v20 }
 0x2cc   :  { %v365_v25 = vpop.f32.mrf.mxu0 }
 0x2cd   :  { %v2468_v26 = vadd.f32 %v365_v25, %v2465_v24 }
 0x2ce   :  { %v1880_v27 = vpop.f32.mrf.mxu0 }
 0x2cf   :  { %v722_v30 = vsel %vm324_vm3, %v2468_v26, -inf }
 0x2d0   :  { %v368_v32 = vpop.f32.mrf.mxu0  ;;  %723 = vmax.xlane.f32.xlu0 %v722_v30 }
 0x2d1   :  { %v2475_v33 = vadd.f32 %v368_v32, %v2470_v29 }
 0x2d2   :  { %v1881_v34 = vpop.f32.mrf.mxu0 }
 0x2d3   :  { %v725_v36 = vsel %vm324_vm3, %v2475_v33, -inf }
 0x2d4   :  { %726 = vmax.xlane.f32.xlu1 %v725_v36 }
 0x2d6   :  { %v415_v37 = vpop.f32.mrf.mxu1 }
 0x2d7   :  { %v2480_v38 = vadd.f32 %v415_v37, %v2465_v24 }
 0x2d8   :  { %v1886_v39 = vpop.f32.mrf.mxu1 }
 0x2d9   :  { %v728_v40 = vsel %vm324_vm3, %v2480_v38, -inf }
 0x2da   :  { %v418_v41 = vpop.f32.mrf.mxu1  ;;  %729 = vmax.xlane.f32.xlu0 %v728_v40 }
 0x2db   :  { %v2485_v42 = vadd.f32 %v418_v41, %v2470_v29 }
 0x2dc   :  { %v1887_v43 = vpop.f32.mrf.mxu1 }
 0x2dd   :  { %v731_v45 = vsel %vm324_vm3, %v2485_v42, -inf }
 0x2de   :  { %732 = vmax.xlane.f32.xlu0 %v731_v45 }
 0x335   :  { %v465_v46 = vpop.f32.mrf.mxu1 }
 0x336   :  { %v2490_v47 = vadd.f32 %v465_v46, %v2465_v24 }
 0x337   :  { %v1892_v48 = vpop.f32.mrf.mxu1 }
 0x338   :  { %v734_v49 = vsel %vm324_vm3, %v2490_v47, -inf }
 0x339   :  { %735 = vmax.xlane.f32.xlu0 %v734_v49  ;;  %v468_v50 = vpop.f32.mrf.mxu1 }
 0x33a   :  { %v2495_v51 = vadd.f32 %v468_v50, %v2470_v29 }
 0x33b   :  { %v1893_v52 = vpop.f32.mrf.mxu1 }
 0x33c   :  { %v737_v53 = vsel %vm324_vm3, %v2495_v51, -inf }
 0x33d   :  { %v515_v54 = vpop.f32.mrf.mxu0  ;;  %738 = vmax.xlane.f32.xlu1 %v737_v53 }
 0x33e   :  { %v2500_v55 = vadd.f32 %v515_v54, %v2465_v24 }
 0x33f   :  { %v1898_v56 = vpop.f32.mrf.mxu0 }
 0x340   :  { %v740_v58 = vsel %vm324_vm3, %v2500_v55, -inf }
 0x341   :  { %v518_v59 = vpop.f32.mrf.mxu0  ;;  %741 = vmax.xlane.f32.xlu0 %v740_v58 }
 0x342   :  { %v2505_v60 = vadd.f32 %v518_v59, %v2470_v29  ;;  %v565_v61 = vpop.f32.mrf.mxu1 }
 0x343   :  { %v2508_v63 = vadd.f32 %v565_v61, %v2465_v24  ;;  %v1899_v3 = vpop.f32.mrf.mxu0 }
 0x344   :  { %v1904_v4 = vpop.f32.mrf.mxu1  ;;  %v743_v7 = vsel %vm324_vm3, %v2505_v60, -inf }
 0x345   :  { %744 = vmax.xlane.f32.xlu1 %v743_v7  ;;  %v746_v8 = vsel %vm324_vm3, %v2508_v63, -inf }
 0x346   :  { %v615_v9 = vpop.f32.mrf.mxu0  ;;  %747 = vmax.xlane.f32.xlu0 %v746_v8  ;;  %v568_v1 = vpop.f32.mrf.mxu1 }
 0x347   :  { %v2515_v10 = vadd.f32 %v615_v9, %v2465_v24  ;;  %v2518_v11 = vadd.f32 %v568_v1, %v2470_v29 }
 0x348   :  { %v1905_v12 = vpop.f32.mrf.mxu1  ;;  %v1910_v13 = vpop.f32.mrf.mxu0 }
 0x349   :  { %v752_v14 = vsel %vm324_vm3, %v2515_v10, -inf  ;;  %v749_v2 = vsel %vm324_vm3, %v2518_v11, -inf }
 0x34a   :  { %v618_v15 = vpop.f32.mrf.mxu0  ;;  %753 = vmax.xlane.f32.xlu0 %v752_v14  ;;  %750 = vmax.xlane.f32.xlu1 %v749_v2  ;;  %v665_v16 = vpop.f32.mrf.mxu1 }
 0x34b   :  { %v2525_v17 = vadd.f32 %v618_v15, %v2470_v29  ;;  %v2528_v18 = vadd.f32 %v665_v16, %v2465_v24 }
 0x34c   :  { %v1911_v6 = vpop.f32.mrf.mxu0  ;;  %v1916_v19 = vpop.f32.mrf.mxu1 }
 0x34d   :  { %v755_v21 = vsel %vm324_vm3, %v2525_v17, -inf  ;;  %v758_v22 = vsel %vm324_vm3, %v2528_v18, -inf }
 0x34e   :  { %v715_v23 = vpop.f32.mrf.mxu0  ;;  %756 = vmax.xlane.f32.xlu1 %v755_v21  ;;  %759 = vmax.xlane.f32.xlu0 %v758_v22  ;;  %v668_v25 = vpop.f32.mrf.mxu1 }
 0x34f   :  { %v2535_v27 = vadd.f32 %v715_v23, %v2465_v24  ;;  %v2538_v30 = vadd.f32 %v668_v25, %v2470_v29 }
 0x350   :  { %v1917_v32 = vpop.f32.mrf.mxu1  ;;  %v1922_v34 = vpop.f32.mrf.mxu0 }
 0x351   :  { %v764_v36 = vsel %vm324_vm3, %v2535_v27, -inf  ;;  %v761_v37 = vsel %vm324_vm3, %v2538_v30, -inf }
 0x352   :  { %v718_v39 = vpop.f32.mrf.mxu0  ;;  %765 = vmax.xlane.f32.xlu0 %v764_v36  ;;  %762 = vmax.xlane.f32.xlu1 %v761_v37 }
 0x354   :  { %v1923_v40 = vpop.f32.mrf.mxu0 }
 0x359   :  { %v724_v24 = vpop.xlane.xlu0 %723 }
 0x35a   :  { %v770_v41 = vsub.f32 %v2468_v26, %v724_v24 }
 0x35c   :  { %v786_v45 = vmul.f32 1.442695, %v770_v41 }
 0x35e   :  { %2137 = vpow2.f32 %v786_v45 }
 0x363   :  { %953 = vrot.lane.b32.xlu1 %v2385_v31, %s2283_s10  ;;  %v730_v43 = vpop.xlane.xlu0 %729 }
 0x364   :  { %v772_v46 = vsub.f32 %v2480_v38, %v730_v43  ;;  %v727_v38 = vpop.xlane.xlu1 %726 }
 0x366   :  { %v790_v31 = vmul.f32 1.442695, %v772_v46 }
 0x367   :  { %1000 = vrot.lane.b32.xlu1 %v2389_v35, %s2283_s10  ;;  %v733_v49 = vpop.xlane.xlu0 %732 }
 0x368   :  { %906 = vrot.lane.b32.xlu0 %v2378_v28, %s2283_s10  ;;  %2139 = vpow2.f32 %v790_v31  ;;  %v2559_v28 = vadd.f32 %v718_v39, %v2470_v29  ;;  %v771_v29 = vsub.f32 %v2475_v33, %v727_v38  ;;  %v773_v52 = vsub.f32 %v2485_v42, %v733_v49 }
 0x36a   :  { %v788_v50 = vmul.f32 1.442695, %v771_v29  ;;  %v792_v53 = vmul.f32 1.442695, %v773_v52 }
 0x36b   :  { %1047 = vrot.lane.b32.xlu1 %v2393_v44, %s2283_s10  ;;  %v2556_v35 = vpop.eup %2137 }
 0x36c   :  { %1094 = vrot.lane.b32.xlu0 %v2400_v57, %s2283_s10  ;;  %v818_v44 = vsel %vm324_vm3, %v2556_v35, 0.0  ;;  %v767_v57 = vsel %vm324_vm3, %v2559_v28, -inf  ;;  %2141 = vpow2.f32 %v788_v50 }
 0x36d   :  { %2143 = vpow2.f32 %v792_v53 }
 0x375   :  { %v2563_v48 = vpop.eup %2139 }
 0x376   :  { %v824_v26 = vsel %vm324_vm3, %v2563_v48, 0.0 }
 0x379   :  { %v2573_v54 = vpop.eup %2141 }
 0x37a   :  { %v821_v59 = vsel %vm324_vm3, %v2573_v54, 0.0  ;;  %v2578_v61 = vpop.eup %2143 }
 0x37b   :  { %v827_v42 = vsel %vm324_vm3, %v2578_v61, 0.0 }
 0x38b   :  { %819 = vadd.xlane.f32.xlu0 %v818_v44 }
 0x38f   :  { %768 = vmax.xlane.f32.xlu1 %v767_v57  ;;  %825 = vadd.xlane.f32.xlu0 %v824_v26 }
 0x3a0   :  { %1141 = vrot.lane.b32.xlu1 %v2409_v0, %s2283_s10 }
 0x3c2   :  { %v736_v56 = vpop.xlane.xlu0 %735 }
 0x3c3   :  { %v774_v58 = vsub.f32 %v2490_v47, %v736_v56 }
 0x3c4   :  { %822 = vadd.xlane.f32.xlu1 %v821_v59 }
 0x3c5   :  { %v794_v0 = vmul.f32 1.442695, %v774_v58 }
 0x3c6   :  { %v739_v33 = vpop.xlane.xlu1 %738 }
 0x3c7   :  { %2145 = vpow2.f32 %v794_v0  ;;  %v775_v3 = vsub.f32 %v2495_v51, %v739_v33 }
 0x3c8   :  { %828 = vadd.xlane.f32.xlu1 %v827_v42 }
 0x3c9   :  { %v796_v4 = vmul.f32 1.442695, %v775_v3 }
 0x3ca   :  { %v742_v7 = vpop.xlane.xlu0 %741 }
 0x3cb   :  { %2147 = vpow2.f32 %v796_v4  ;;  %v776_v47 = vsub.f32 %v2500_v55, %v742_v7 }
 0x3cd   :  { %v798_v8 = vmul.f32 1.442695, %v776_v47 }
 0x3ce   :  { %v745_v9 = vpop.xlane.xlu1 %744 }
 0x3cf   :  { %2149 = vpow2.f32 %v798_v8  ;;  %v777_v1 = vsub.f32 %v2505_v60, %v745_v9  ;;  %v748_v12 = vpop.xlane.xlu0 %747 }
 0x3d0   :  { %v778_v13 = vsub.f32 %v2508_v63, %v748_v12 }
 0x3d1   :  { %v800_v14 = vmul.f32 1.442695, %v777_v1 }
 0x3d2   :  { %v802_v2 = vmul.f32 1.442695, %v778_v13 }
 0x3d3   :  { %2151 = vpow2.f32 %v800_v14  ;;  %v751_v51 = vpop.xlane.xlu1 %750  ;;  %v754_v15 = vpop.xlane.xlu0 %753 }
 0x3d4   :  { %v2586_v16 = vpop.eup %2145  ;;  %2153 = vpow2.f32 %v802_v2  ;;  %v779_v6 = vsub.f32 %v2518_v11, %v751_v51  ;;  %v780_v55 = vsub.f32 %v2515_v10, %v754_v15 }
 0x3d5   :  { %v830_v19 = vsel %vm324_vm3, %v2586_v16, 0.0 }
 0x3d6   :  { %v804_v21 = vmul.f32 1.442695, %v779_v6  ;;  %v806_v60 = vmul.f32 1.442695, %v780_v55  ;;  %831 = vadd.xlane.f32.xlu0 %v830_v19 }
 0x3d7   :  { %v757_v22 = vpop.xlane.xlu1 %756  ;;  %v760_v63 = vpop.xlane.xlu0 %759 }
 0x3d8   :  { %v2592_v23 = vpop.eup %2147  ;;  %2155 = vpow2.f32 %v804_v21  ;;  %v781_v25 = vsub.f32 %v2525_v17, %v757_v22  ;;  %v782_v32 = vsub.f32 %v2528_v18, %v760_v63 }
 0x3d9   :  { %2157 = vpow2.f32 %v806_v60  ;;  %v833_v11 = vsel %vm324_vm3, %v2592_v23, 0.0 }
 0x3da   :  { %v808_v10 = vmul.f32 1.442695, %v781_v25  ;;  %v810_v34 = vmul.f32 1.442695, %v782_v32  ;;  %834 = vadd.xlane.f32.xlu1 %v833_v11 }
 0x3db   :  { %v763_v36 = vpop.xlane.xlu1 %762  ;;  %v766_v37 = vpop.xlane.xlu0 %765 }
 0x3dc   :  { %v2598_v39 = vpop.eup %2149  ;;  %2159 = vpow2.f32 %v808_v10  ;;  %v783_v40 = vsub.f32 %v2538_v30, %v763_v36  ;;  %v784_v24 = vsub.f32 %v2535_v27, %v766_v37 }
 0x3dd   :  { %2161 = vpow2.f32 %v810_v34  ;;  %v836_v17 = vsel %vm324_vm3, %v2598_v39, 0.0 }
 0x3de   :  { %v812_v18 = vmul.f32 1.442695, %v783_v40  ;;  %v814_v41 = vmul.f32 1.442695, %v784_v24  ;;  %837 = vadd.xlane.f32.xlu0 %v836_v17 }
 0x3df   :  { %v954_v43 = vpop.permute.xlu1 %953  ;;  %v907_v45 = vpop.permute.xlu0 %906 }
 0x3e0   :  { %v2604_v46 = vpop.eup %2151  ;;  %2163 = vpow2.f32 %v812_v18  ;;  %1925 = vmatpush3.bf16.msra.mxu1 %v907_v45  ;;  %1931 = vmatpush3.bf16.msra.mxu0 %v954_v43 }
 0x3e1   :  { %v2606_v31 = vpop.eup %2153  ;;  %2165 = vpow2.f32 %v814_v41  ;;  %v839_v27 = vsel %vm324_vm3, %v2604_v46, 0.0  ;;  %1936 = vmatprep.subr.bf16.mxu1 %v2279_v20  ;;  %1942 = vmatprep.subr.bf16.mxu0 %v2279_v20 }
 0x3e2   :  { %840 = vadd.xlane.f32.xlu1 %v839_v27  ;;  %v842_v30 = vsel %vm324_vm3, %v2606_v31, 0.0 }
 0x3e3   :  { %843 = vadd.xlane.f32.xlu0 %v842_v30  ;;  %v1001_v0 = vpop.permute.xlu1 %1000  ;;  %v1095_v8 = vpop.permute.xlu0 %1094 }
 0x3e5   :  { %v2614_v44 = vpop.eup %2155 }
 0x3e6   :  { %v2616_v57 = vpop.eup %2157  ;;  %v845_v26 = vsel %vm324_vm3, %v2614_v44, 0.0 }
 0x3e7   :  { %846 = vadd.xlane.f32.xlu1 %v845_v26  ;;  %v848_v38 = vsel %vm324_vm3, %v2616_v57, 0.0  ;;  %v1048_v33 = vpop.permute.xlu1 %1047 }
 0x3e8   :  { %849 = vadd.xlane.f32.xlu0 %v848_v38 }
 0x3e9   :  { %v2622_v29 = vpop.eup %2159 }
 0x3ea   :  { %v2624_v49 = vpop.eup %2161  ;;  %v851_v50 = vsel %vm324_vm3, %v2622_v29, 0.0 }
 0x3eb   :  { %852 = vadd.xlane.f32.xlu1 %v851_v50  ;;  %v854_v52 = vsel %vm324_vm3, %v2624_v49, 0.0 }
 0x3ec   :  { %855 = vadd.xlane.f32.xlu0 %v854_v52 }
 0x3ed   :  { %v2630_v53 = vpop.eup %2163 }
 0x3ee   :  { %v2632_v56 = vpop.eup %2165  ;;  %v857_v58 = vsel %vm324_vm3, %v2630_v53, 0.0 }
 0x3ef   :  { %858 = vadd.xlane.f32.xlu1 %v857_v58  ;;  %v860_v59 = vsel %vm324_vm3, %v2632_v56, 0.0 }
 0x3f0   :  { %861 = vadd.xlane.f32.xlu0 %v860_v59 }
 0x406   :  { %1188 = vrot.lane.b32.xlu0 %v2407_v62, %s2283_s10 }
 0x414   :  { %v820_v9 = vpop.xlane.xlu0 %819 }
 0x418   :  { %v769_v3 = vpop.xlane.xlu1 %768  ;;  %v826_v62 = vpop.xlane.xlu0 %825 }
 0x419   :  { %v785_v42 = vsub.f32 %v2559_v28, %v769_v3 }
 0x41b   :  { %v816_v4 = vmul.f32 1.442695, %v785_v42 }
 0x41c   :  { %v2647_v1 = vpop.permute.xlu1 %1141 }
 0x41d   :  { %2167 = vpow2.f32 %v816_v4 }
 0x41e   :  { %2169 = vrcp.f32 %v820_v9 }
 0x42a   :  { %v2641_v7 = vpop.eup %2167 }
 0x42b   :  { %v863_v47 = vsel %vm324_vm3, %v2641_v7, 0.0  ;;  %v2170_v13 = vpop.eup %2169 }
 0x42c   :  { %864 = vadd.xlane.f32.xlu1 %v863_v47  ;;  %v882_v2 = vmul.f32 %v2170_v13, %v2556_v35 }
 0x43d   :  { %1235 = vrot.lane.b32.xlu1 %v2415_v5, %s2283_s10 }
 0x44d   :  { %v823_v12 = vpop.xlane.xlu1 %822 }
 0x44e   :  { %2171 = vrcp.f32 %v823_v12 }
 0x44f   :  { %2173 = vrcp.f32 %v826_v62 }
 0x451   :  { %v829_v28 = vpop.xlane.xlu1 %828 }
 0x452   :  { %2175 = vrcp.f32 %v829_v28 }
 0x45b   :  { %v2172_v14 = vpop.eup %2171 }
 0x45c   :  { %v883_v51 = vmul.f32 %v2172_v14, %v2573_v54  ;;  %v2174_v15 = vpop.eup %2173 }
 0x45d   :  { %v884_v19 = vmul.f32 %v2174_v15, %v2563_v48 }
 0x45e   :  { %v898_v6 = vpack.c.bf16 %v883_v51, %v882_v2 }
 0x45f   :  { %v2176_v5 = vpop.eup %2175  ;;  %v832_v55 = vpop.xlane.xlu0 %831 }
 0x460   :  { %1927 = vmatmul.mubr.msk.bf16.vlgmr.msra.gmra.mxu1 %vm324_vm3, %v898_v6  ;;  %v885_v21 = vmul.f32 %v2176_v5, %v2578_v61  ;;  %2177 = vrcp.f32 %v832_v55 }
 0x461   :  { %1937 = vmatpush3.bf16.msra.mxu1 %v1001_v0  ;;  %1938 = vmatprep.mubr.msk.bf16.mxu1 %vm2280_vm1, %v2279_v20 }
 0x462   :  { %v899_v60 = vpack.c.bf16 %v885_v21, %v884_v19  ;;  %1948 = vmatprep.subr.bf16.mxu1 %v2279_v20 }
 0x463   :  { %v835_v35 = vpop.xlane.xlu1 %834 }
 0x464   :  { %2179 = vrcp.f32 %v835_v35  ;;  %1933 = vmatmul.mubr.msk.bf16.vlgmr.msra.gmra.mxu0 %vm324_vm3, %v899_v60 }
 0x465   :  { %1943 = vmatpush3.bf16.msra.mxu0 %v1048_v33  ;;  %1944 = vmatprep.mubr.msk.bf16.mxu0 %vm2280_vm1, %v2279_v20 }
 0x466   :  { %1954 = vmatprep.subr.bf16.mxu0 %v2279_v20 }
 0x467   :  { %v838_v48 = vpop.xlane.xlu0 %837 }
 0x468   :  { %2181 = vrcp.f32 %v838_v48 }
 0x46b   :  { %v841_v54 = vpop.xlane.xlu1 %840 }
 0x46c   :  { %2183 = vrcp.f32 %v841_v54  ;;  %v844_v61 = vpop.xlane.xlu0 %843 }
 0x46d   :  { %v2178_v22 = vpop.eup %2177  ;;  %2185 = vrcp.f32 %v844_v61 }
 0x46e   :  { %v886_v11 = vmul.f32 %v2178_v22, %v2586_v16  ;;  %v2113_v22 = vld [vmem:[#allocation2 + $0x6c] ss:$16 sps:$4 sm:$0xff]  }
 0x470   :  { %v847_v63 = vpop.xlane.xlu1 %846 }
 0x471   :  { %v2180_v25 = vpop.eup %2179  ;;  %2187 = vrcp.f32 %v847_v63  ;;  %v850_v32 = vpop.xlane.xlu0 %849  ;;  %v2114_v63 = vld [vmem:[#allocation2 + $0x4c] ss:$16 sps:$4 sm:$0xff]  }
 0x472   :  { %v887_v10 = vmul.f32 %v2180_v25, %v2592_v23  ;;  %2189 = vrcp.f32 %v850_v32 }
 0x474   :  { %v853_v34 = vpop.xlane.xlu1 %852  ;;  %v900_v36 = vpack.c.bf16 %v887_v10, %v886_v11 }
 0x475   :  { %2191 = vrcp.f32 %v853_v34  ;;  %v856_v37 = vpop.xlane.xlu0 %855  ;;  %v2182_v40 = vpop.eup %2181 }
 0x476   :  { %1939 = vmatmul.mubr.msk.bf16.vlgmr.msra.gmra.mxu1 %vm324_vm3, %v900_v36  ;;  %2193 = vrcp.f32 %v856_v37  ;;  %v888_v16 = vmul.f32 %v2182_v40, %v2598_v39  ;;  %v2115_v36 = vld [vmem:[#allocation2 + $0x2c] ss:$16 sps:$4 sm:$0xff]  }
 0x477   :  { %1949 = vmatpush3.bf16.msra.mxu1 %v1095_v8  ;;  %1950 = vmatprep.mubr.msk.bf16.mxu1 %vm2280_vm1, %v2279_v20 }
 0x478   :  { %v859_v24 = vpop.xlane.xlu1 %858  ;;  %1960 = vmatprep.subr.bf16.mxu1 %v2279_v20 }
 0x479   :  { %v2184_v17 = vpop.eup %2183  ;;  %2195 = vrcp.f32 %v859_v24  ;;  %v862_v43 = vpop.xlane.xlu0 %861 }
 0x47a   :  { %v889_v23 = vmul.f32 %v2184_v17, %v2604_v46  ;;  %v2186_v18 = vpop.eup %2185  ;;  %2197 = vrcp.f32 %v862_v43  ;;  %v2116_v17 = vld [vmem:[#allocation2 + $0xc] ss:$16 sps:$4 sm:$0xff]  }
 0x47b   :  { %v890_v27 = vmul.f32 %v2186_v18, %v2606_v31 }
 0x47c   :  { %v901_v41 = vpack.c.bf16 %v889_v23, %v888_v16 }
 0x47d   :  { %v1189_v38 = vpop.permute.xlu0 %1188 }
 0x47e   :  { %v2188_v45 = vpop.eup %2187  ;;  %1945 = vmatmul.mubr.msk.bf16.vlgmr.msra.gmra.mxu0 %vm324_vm3, %v901_v41 }
 0x47f   :  { %1955 = vmatpush3.bf16.msra.mxu0 %v2647_v1  ;;  %v891_v30 = vmul.f32 %v2188_v45, %v2614_v44  ;;  %1956 = vmatprep.mubr.msk.bf16.mxu0 %vm2280_vm1, %v2279_v20  ;;  %v2190_v26 = vpop.eup %2189 }
 0x480   :  { %1966 = vmatprep.subr.bf16.mxu0 %v2279_v20  ;;  %v892_v50 = vmul.f32 %v2190_v26, %v2616_v57 }
 0x481   :  { %v902_v39 = vpack.c.bf16 %v891_v30, %v890_v27 }
 0x482   :  { %v2192_v46 = vpop.eup %2191 }
 0x483   :  { %1951 = vmatmul.mubr.msk.bf16.vlgmr.msra.gmra.mxu1 %vm324_vm3, %v902_v39  ;;  %v893_v52 = vmul.f32 %v2192_v46, %v2622_v29  ;;  %v2194_v58 = vpop.eup %2193 }
 0x484   :  { %1961 = vmatpush3.bf16.msra.mxu1 %v1189_v38  ;;  %1962 = vmatprep.mubr.msk.bf16.mxu1 %vm2280_vm1, %v2279_v20  ;;  %v894_v59 = vmul.f32 %v2194_v58, %v2624_v49 }
 0x485   :  { %v903_v31 = vpack.c.bf16 %v893_v52, %v892_v50  ;;  %1972 = vmatprep.subr.bf16.mxu1 %v2113_v22 }
 0x486   :  { %v2196_v44 = vpop.eup %2195 }
 0x487   :  { %1957 = vmatmul.mubr.msk.bf16.vlgmr.msra.gmra.mxu0 %vm324_vm3, %v903_v31  ;;  %v895_v0 = vmul.f32 %v2196_v44, %v2630_v53  ;;  %v2198_v3 = vpop.eup %2197 }
 0x488   :  { %1968 = vmatprep.mubr.msk.bf16.mxu0 %vm2280_vm1, %v2279_v20  ;;  %v896_v4 = vmul.f32 %v2198_v3, %v2632_v56 }
 0x489   :  { %v904_v33 = vpack.c.bf16 %v895_v0, %v894_v59 }
 0x48b   :  { %1963 = vmatmul.mubr.msk.bf16.vlgmr.msra.gmra.mxu1 %vm324_vm3, %v904_v33 }
 0x48c   :  { %1973 = vmatpush3.bf16.msra.mxu1 %v2113_v22 }
 0x48d   :  { %1974 = vmatprep.subr.bf16.mxu1 %v2114_v63 }
 0x490   :  { %1975 = vmatpush3.bf16.msra.mxu1 %v2114_v63 }
 0x491   :  { %1976 = vmatprep.subr.bf16.mxu1 %v2115_v36 }
 0x494   :  { %1977 = vmatpush3.bf16.msra.mxu1 %v2115_v36 }
 0x495   :  { %1978 = vmatprep.subr.bf16.mxu1 %v2116_v17 }
 0x498   :  { %1979 = vmatpush3.bf16.msra.mxu1 %v2116_v17 }
 0x4b5   :  { %v865_v57 = vpop.xlane.xlu1 %864 }
 0x4b6   :  { %2199 = vrcp.f32 %v865_v57 }
 0x4b9   :  { %v1236_v29 = vpop.permute.xlu1 %1235 }
 0x4ba   :  { %1967 = vmatpush3.bf16.msra.mxu0 %v1236_v29 }
 0x4c3   :  { %v2200_v42 = vpop.eup %2199 }
 0x4c4   :  { %v897_v47 = vmul.f32 %v2200_v42, %v2641_v7 }
 0x4c6   :  { %v905_v49 = vpack.c.bf16 %v897_v47, %v896_v4 }
 0x4c8   :  { %1969 = vmatmul.mubr.msk.bf16.vlgmr.msra.gmra.mxu0 %vm324_vm3, %v905_v49 }
 0x520   :  { %v2690_v53 = vpop.f32.mrf.mxu1 }
 0x522   :  { %v1928_v20 = vpop.f32.mrf.mxu1 }
 0x524   :  { %v2692_v8 = vpop.f32.mrf.mxu1  ;;  %v2694_v9 = vpop.f32.mrf.mxu0 }
 0x526   :  { %v1929_v1 = vpop.f32.mrf.mxu1  ;;  %v1934_v62 = vpop.f32.mrf.mxu0 }
 0x528   :  { %v2696_v12 = vpop.f32.mrf.mxu0 }
 0x52a   :  { %v1935_v28 = vpop.f32.mrf.mxu0 }
 0x536   :  { %v1040_v13 = vpop.f32.mrf.mxu1 }
 0x538   :  { %v1940_v14 = vpop.f32.mrf.mxu1 }
 0x53a   :  { %v1043_v56 = vpop.f32.mrf.mxu1 }
 0x53b   :  { %v2071_v2 = vpack.i.bf16 %v1043_v56, %v1040_v13 }
 0x53c   :  { %v1941_v7 = vpop.f32.mrf.mxu1 }
 0x53d   :  { %2072 = vrot.lane.b32.xlu0 %v2071_v2, %s2275_s19 }
 0x53e   :  { %v1087_v51 = vpop.f32.mrf.mxu0 }
 0x540   :  { %v1946_v15 = vpop.f32.mrf.mxu0 }
 0x542   :  { %v1090_v6 = vpop.f32.mrf.mxu0 }
 0x543   :  { %v2076_v5 = vpack.i.bf16 %v1090_v6, %v1087_v51  ;;  %v1134_v55 = vpop.f32.mrf.mxu1  ;;  %v2226_v51 = vld [vmem:[%s2816_s0] sm:$0xff] }
 0x544   :  { %v1947_v19 = vpop.f32.mrf.mxu0 }
 0x545   :  { %2077 = vrot.lane.b32.xlu1 %v2076_v5, %s2275_s19  ;;  %v1952_v21 = vpop.f32.mrf.mxu1 }
 0x547   :  { %v1137_v60 = vpop.f32.mrf.mxu1  ;;  %v1181_v35 = vpop.f32.mrf.mxu0 }
 0x548   :  { %v2081_v48 = vpack.i.bf16 %v1137_v60, %v1134_v55  ;;  %v2227_v60 = vld [vmem:[%s2816_s0 + $0x18] sm:$0xff] }
 0x549   :  { %v1953_v54 = vpop.f32.mrf.mxu1  ;;  %v1958_v61 = vpop.f32.mrf.mxu0 }
 0x54a   :  { %2082 = vrot.lane.b32.xlu0 %v2081_v48, %s2277_s7  ;;  %v2228_v48 = vld [vmem:[%s2816_s0 + $0x8] sm:$0xff] }
 0x54b   :  { %v1184_v25 = vpop.f32.mrf.mxu0  ;;  %v1228_v32 = vpop.f32.mrf.mxu1 }
 0x54c   :  { %v2086_v11 = vpack.i.bf16 %v1184_v25, %v1181_v35 }
 0x54d   :  { %v1959_v10 = vpop.f32.mrf.mxu0  ;;  %v1964_v34 = vpop.f32.mrf.mxu1 }
 0x54e   :  { %2087 = vrot.lane.b32.xlu1 %v2086_v11, %s2277_s7 }
 0x54f   :  { %v1231_v37 = vpop.f32.mrf.mxu1 }
 0x550   :  { %v2091_v40 = vpack.i.bf16 %v1231_v37, %v1228_v32 }
 0x551   :  { %v1965_v24 = vpop.f32.mrf.mxu1 }
 0x552   :  { %2092 = vrot.lane.b32.xlu0 %v2091_v40, %s2284_s11 }
 0x588   :  { %v1275_v16 = vpop.f32.mrf.mxu0 }
 0x58a   :  { %v1970_v23 = vpop.f32.mrf.mxu0 }
 0x58c   :  { %v1278_v18 = vpop.f32.mrf.mxu0 }
 0x58d   :  { %v2096_v41 = vpack.i.bf16 %v1278_v18, %v1275_v16  ;;  %v2117_v18 = vld [vmem:[#allocation2 + $0x68] ss:$16 sps:$4 sm:$0xff]  }
 0x58e   :  { %v1971_v43 = vpop.f32.mrf.mxu0  ;;  %1984 = vmatprep.subr.bf16.mxu0 %v2117_v18 }
 0x58f   :  { %2097 = vrot.lane.b32.xlu1 %v2096_v41, %s2284_s11  ;;  %1985 = vmatpush3.bf16.msra.mxu0 %v2117_v18  ;;  %v2118_v41 = vld [vmem:[#allocation2 + $0x48] ss:$16 sps:$4 sm:$0xff]  }
 0x590   :  { %1986 = vmatprep.subr.bf16.mxu0 %v2118_v41  ;;  %v2119_v43 = vld [vmem:[#allocation2 + $0x28] ss:$16 sps:$4 sm:$0xff]  }
 0x591   :  { %v2125_v18 = vld [vmem:[%s2819_s3 + $0x18] sm:$0xff]  }
 0x593   :  { %1987 = vmatpush3.bf16.msra.mxu0 %v2118_v41  ;;  %v2126_v41 = vld [vmem:[%s2819_s3 + $0x10] sm:$0xff]  }
 0x594   :  { %1988 = vmatprep.subr.bf16.mxu0 %v2119_v43 }
 0x597   :  { %1989 = vmatpush3.bf16.msra.mxu0 %v2119_v43  ;;  %v2127_v43 = vld [vmem:[%s2819_s3 + $0x8] sm:$0xff]  }
 0x5af   :  { %v2073_v45 = vpop.permute.xlu0 %2072 }
 0x5b0   :  { %v2075_v30 = vunpack.i.h.bf16 %v2073_v45  ;;  %v2074_v26 = vunpack.i.l.bf16 %v2073_v45  ;;  %v2120_v45 = vld [vmem:[#allocation2 + $0x8] ss:$16 sps:$4 sm:$0xff]  }
 0x5b1   :  { %1990 = vmatprep.subr.bf16.mxu0 %v2120_v45 }
 0x5b2   :  { %v1331_v50 = vsel %vm324_vm3, %v2692_v8, %v2075_v30  ;;  %v1330_v52 = vsel %vm324_vm3, %v2690_v53, %v2074_v26  ;;  %1991 = vmatpush3.bf16.msra.mxu0 %v2120_v45  ;;  %v2128_v45 = vld [vmem:[%s2819_s3] sm:$0xff]  }
 0x5b7   :  { %v2078_v29 = vpop.permute.xlu1 %2077 }
 0x5b8   :  { %v2080_v42 = vunpack.i.h.bf16 %v2078_v29  ;;  %v2079_v4 = vunpack.i.l.bf16 %v2078_v29 }
 0x5ba   :  { %v1333_v20 = vsel %vm324_vm3, %v2696_v12, %v2080_v42  ;;  %v1332_v8 = vsel %vm324_vm3, %v2694_v9, %v2079_v4  ;;  %v1793_v12 = vld [vmem:[%s2817_s1 + $0x4] ss:$0 sm:$0xff]  ;;  %v2225_v9 = vld [vmem:[%s2816_s0 + $0x10] sm:$0xff] }
 0x5bb   :  { %v1349_v7 = vadd.f32 %v2225_v9, %v1793_v12  ;;  %v1347_v15 = vadd.f32 %v2226_v51, %v1793_v12  ;;  %v1350_v35 = vadd.f32 %v2227_v60, %v1793_v12  ;;  %v1348_v54 = vadd.f32 %v2228_v48, %v1793_v12 }
 0x5bc   :  { %v2083_v27 = vpop.permute.xlu0 %2082 }
 0x5bd   :  { %v2085_v39 = vunpack.i.h.bf16 %v2083_v27  ;;  %v2084_v46 = vunpack.i.l.bf16 %v2083_v27 }
 0x5bf   :  { %v1334_v44 = vsel %vm283_vm2, %v1330_v52, %v2084_v46  ;;  %v1335_v59 = vsel %vm283_vm2, %v1331_v50, %v2085_v39 }
 0x5c0   :  { %v2088_v3 = vpop.permute.xlu1 %2087 }
 0x5c1   :  { %v2090_v47 = vunpack.i.h.bf16 %v2088_v3  ;;  %v2089_v49 = vunpack.i.l.bf16 %v2088_v3 }
 0x5c3   :  { %v1337_v28 = vsel %vm283_vm2, %v1333_v20, %v2090_v47  ;;  %v1336_v13 = vsel %vm283_vm2, %v1332_v8, %v2089_v49 }
 0x5c4   :  { %v2093_v38 = vpop.permute.xlu0 %2092 }
 0x5c5   :  { %v2095_v58 = vunpack.i.h.bf16 %v2093_v38  ;;  %v2094_v31 = vunpack.i.l.bf16 %v2093_v38 }
 0x5c7   :  { %v1339_v0 = vsel %vm1338_vm6, %v1334_v44, %v2094_v31  ;;  %v1340_v33 = vsel %vm1338_vm6, %v1335_v59, %v2095_v58 }
 0x5c8   :  { %v1351_v57 = vpack.c.bf16 %v1340_v33, %v1339_v0 }
 0x5ca   :  { %1980 = vmatprep.mubr.msk.bf16.mxu1 %vm68_vm0, %v1351_v57 }
 0x601   :  { %v2098_v53 = vpop.permute.xlu1 %2097 }
 0x602   :  { %v2100_v1 = vunpack.i.h.bf16 %v2098_v53  ;;  %v2099_v62 = vunpack.i.l.bf16 %v2098_v53 }
 0x604   :  { %v1342_v14 = vsel %vm1338_vm6, %v1337_v28, %v2100_v1  ;;  %v1341_v56 = vsel %vm1338_vm6, %v1336_v13, %v2099_v62 }
 0x605   :  { %v1352_v2 = vpack.c.bf16 %v1342_v14, %v1341_v56 }
 0x607   :  { %1981 = vmatmul.mubr.msk.bf16.vlgmr.msra.gmra.mxu1 %vm68_vm0, %v1352_v2  ;;  %v1800_v2 = vld [vmem:[%s2817_s1 + $0x2] ss:$0 sm:$0xff] }
 0x6c7   :  { %v1982_v6 = vpop.f32.mrf.mxu1 }
 0x6c8   :  { %v2729_v5 = vadd.f32 %v1982_v6, %v1349_v7 }
 0x6c9   :  { %v1417_v55 = vpop.f32.mrf.mxu1 }
 0x6ca   :  { %v2731_v19 = vadd.f32 %v1417_v55, %v1347_v15  ;;  %v1442_v21 = vsel %vm68_vm0, %v2729_v5, 0.0  ;;  %v1454_v17 = vmul.f32 %v2729_v5, %v2729_v5 }
 0x6cb   :  { %1443 = vadd.xlane.f32.xlu0 %v1442_v21  ;;  %v1983_v61 = vpop.f32.mrf.mxu1  ;;  %v1801_v21 = vld [vmem:[%s2817_s1 + $0x3] ss:$0 sm:$0xff] }
 0x6cc   :  { %v2741_v63 = vadd.f32 %v1983_v61, %v1350_v35  ;;  %v1436_v32 = vsel %vm68_vm0, %v2731_v19, 0.0  ;;  %v1452_v36 = vmul.f32 %v2731_v19, %v2731_v19  ;;  %v1462_v23 = vsel %vm68_vm0, %v1454_v17, 0.0  ;;  %v2122_v17 = vld [vmem:[%s2819_s3 + $0x30] sm:$0xff]  }
 0x6cd   :  { %v1420_v22 = vpop.f32.mrf.mxu1 }
 0x6ce   :  { %v2743_v25 = vadd.f32 %v1420_v22, %v1348_v54  ;;  %v1445_v34 = vsel %vm68_vm0, %v2741_v63, 0.0  ;;  %v1455_v40 = vmul.f32 %v2741_v63, %v2741_v63  ;;  %v1456_v24 = vsel %vm68_vm0, %v1452_v36, 0.0 }
 0x6cf   :  { %1437 = vadd.xlane.f32.xlu0 %v1436_v32 }
 0x6d0   :  { %v1439_v11 = vsel %vm68_vm0, %v2743_v25, 0.0  ;;  %v1453_v10 = vmul.f32 %v2743_v25, %v2743_v25  ;;  %v1465_v16 = vsel %vm68_vm0, %v1455_v40, 0.0 }
 0x6d1   :  { %1440 = vadd.xlane.f32.xlu1 %v1439_v11 }
 0x6d2   :  { %v1459_v37 = vsel %vm68_vm0, %v1453_v10, 0.0 }
 0x6d3   :  { %1446 = vadd.xlane.f32.xlu0 %v1445_v34 }
 0x6d5   :  { %1460 = vadd.xlane.f32.xlu1 %v1459_v37 }
 0x6d7   :  { %1457 = vadd.xlane.f32.xlu0 %v1456_v24  ;;  %v2121_v24 = vld [vmem:[%s2819_s3 + $0x38] sm:$0xff]  }
 0x6d8   :  { %1996 = vmatprep.subr.bf16.mxu1 %v2121_v24 }
 0x6d9   :  { %1466 = vadd.xlane.f32.xlu1 %v1465_v16  ;;  %1997 = vmatpush3.bf16.msra.mxu1 %v2121_v24  ;;  %v2123_v16 = vld [vmem:[%s2819_s3 + $0x28] sm:$0xff]  }
 0x6da   :  { %1998 = vmatprep.subr.bf16.mxu1 %v2122_v17 }
 0x6db   :  { %1463 = vadd.xlane.f32.xlu0 %v1462_v23  ;;  %v2124_v23 = vld [vmem:[%s2819_s3 + $0x20] sm:$0xff]  }
 0x6dd   :  { %1999 = vmatpush3.bf16.msra.mxu1 %v2122_v17 }
 0x6de   :  { %2000 = vmatprep.subr.bf16.mxu1 %v2123_v16 }
 0x6e1   :  { %2001 = vmatpush3.bf16.msra.mxu1 %v2123_v16 }
 0x6e2   :  { %2002 = vmatprep.subr.bf16.mxu1 %v2124_v23 }
 0x6e5   :  { %2003 = vmatpush3.bf16.msra.mxu1 %v2124_v23 }
 0x6e6   :  { %2004 = vmatprep.subr.bf16.mxu1 %v2125_v18 }
 0x6e9   :  { %2005 = vmatpush3.bf16.msra.mxu1 %v2125_v18 }
 0x6ea   :  { %2006 = vmatprep.subr.bf16.mxu1 %v2126_v41 }
 0x6ed   :  { %2007 = vmatpush3.bf16.msra.mxu1 %v2126_v41 }
 0x6ee   :  { %2008 = vmatprep.subr.bf16.mxu1 %v2127_v43 }
 0x6f1   :  { %2009 = vmatpush3.bf16.msra.mxu1 %v2127_v43 }
 0x6f2   :  { %2010 = vmatprep.subr.bf16.mxu1 %v2128_v45 }
 0x6f5   :  { %2011 = vmatpush3.bf16.msra.mxu1 %v2128_v45 }
 0x754   :  { %v1444_v27 = vpop.xlane.xlu0 %1443 }
 0x755   :  { %v1450_v44 = vmul.f32 0.015625, %v1444_v27  ;;  %v1802_v27 = vld [vmem:[%s2817_s1 + $0x5] ss:$0 sm:$0xff] }
 0x757   :  { %v1474_v49 = vmul.f32 %v1450_v44, %v1450_v44  ;;  %v1482_v60 = vsub.f32 %v2729_v5, %v1450_v44 }
 0x758   :  { %v1438_v30 = vpop.xlane.xlu0 %1437 }
 0x759   :  { %v1448_v38 = vmul.f32 0.015625, %v1438_v30 }
 0x75a   :  { %v1441_v26 = vpop.xlane.xlu1 %1440 }
 0x75b   :  { %v1449_v39 = vmul.f32 0.015625, %v1441_v26  ;;  %v1472_v0 = vmul.f32 %v1448_v38, %v1448_v38  ;;  %v1480_v12 = vsub.f32 %v2731_v19, %v1448_v38 }
 0x75c   :  { %v1447_v46 = vpop.xlane.xlu0 %1446 }
 0x75d   :  { %v1473_v52 = vmul.f32 %v1449_v39, %v1449_v39  ;;  %v1451_v58 = vmul.f32 0.015625, %v1447_v46  ;;  %v1481_v14 = vsub.f32 %v2743_v25, %v1449_v39 }
 0x75e   :  { %v1461_v50 = vpop.xlane.xlu1 %1460 }
 0x75f   :  { %v1469_v31 = vmul.f32 0.015625, %v1461_v50  ;;  %v1475_v3 = vmul.f32 %v1451_v58, %v1451_v58  ;;  %v1483_v51 = vsub.f32 %v2741_v63, %v1451_v58 }
 0x760   :  { %v1458_v59 = vpop.xlane.xlu0 %1457 }
 0x761   :  { %v1477_v33 = vsub.f32 %v1469_v31, %v1473_v52  ;;  %v1468_v57 = vmul.f32 0.015625, %v1458_v59 }
 0x762   :  { %v1467_v29 = vpop.xlane.xlu1 %1466 }
 0x763   :  { %v1485_v42 = vadd.f32 1e-05, %v1477_v33  ;;  %v1476_v4 = vsub.f32 %v1468_v57, %v1472_v0  ;;  %v1471_v47 = vmul.f32 0.015625, %v1467_v29 }
 0x764   :  { %v1464_v53 = vpop.xlane.xlu0 %1463 }
 0x765   :  { %2201 = vrsqrt.f32 %v1485_v42  ;;  %v1484_v20 = vadd.f32 1e-05, %v1476_v4  ;;  %v1479_v8 = vsub.f32 %v1471_v47, %v1475_v3  ;;  %v1470_v1 = vmul.f32 0.015625, %v1464_v53 }
 0x767   :  { %2203 = vrsqrt.f32 %v1484_v20  ;;  %v1487_v62 = vadd.f32 1e-05, %v1479_v8  ;;  %v1478_v28 = vsub.f32 %v1470_v1, %v1474_v49 }
 0x769   :  { %2205 = vrsqrt.f32 %v1487_v62  ;;  %v1486_v13 = vadd.f32 1e-05, %v1478_v28 }
 0x76b   :  { %2207 = vrsqrt.f32 %v1486_v13  ;;  %v1813_v13 = vld [vmem:[%s2817_s1 + $0x6] ss:$0 sm:$0xff]  ;;  %s2249_s1 = scalar_lea.vmem %s1754_s18, 512 }
 0x76c   :  { %p2250_p5 = scmp.ne.s32.totalorder %s1754_s18, %s2249_s1  ;;  %p2255_p7 = scmp.lt.s32.totalorder %s2249_s1, %s2249_s1 }
 0x76e   :  { %p2256_p8 = por %p2255_p7, %p2254_p6 }
 0x770   :  { %p2257_p9 = pnand %p2256_p8, %p2250_p5 }
 0x772   :  { %v2202_v56 = vpop.eup %2201 }
 0x773   :  { %v1493_v9 = vmul.f32 %v2202_v56, %v1481_v14 }
 0x774   :  { %v2204_v7 = vpop.eup %2203 }
 0x775   :  { %v1492_v15 = vmul.f32 %v2204_v7, %v1480_v12  ;;  %v1501_v6 = vmul.f32 %v1800_v2, %v1493_v9 }
 0x776   :  { %v2206_v55 = vpop.eup %2205 }
 0x777   :  { %v1495_v35 = vmul.f32 %v2206_v55, %v1483_v51  ;;  %v1500_v48 = vmul.f32 %v1800_v2, %v1492_v15  ;;  %v1509_v32 = vadd.f32 %v1801_v21, %v1501_v6 }
 0x778   :  { %v2208_v54 = vpop.eup %2207 }
 0x779   :  { %v1494_v61 = vmul.f32 %v2208_v54, %v1482_v60  ;;  %v1508_v22 = vadd.f32 %v1801_v21, %v1500_v48  ;;  %v1503_v11 = vmul.f32 %v1800_v2, %v1495_v35 }
 0x77b   :  { %v1512_v10 = vpack.c.bf16 %v1509_v32, %v1508_v22  ;;  %v1502_v34 = vmul.f32 %v1800_v2, %v1494_v61  ;;  %v1511_v37 = vadd.f32 %v1801_v21, %v1503_v11 }
 0x77d   :  { %1992 = vmatprep.mubr.msk.bf16.mxu0 %vm68_vm0, %v1512_v10  ;;  %v1510_v36 = vadd.f32 %v1801_v21, %v1502_v34 }
 0x77f   :  { %v1513_v40 = vpack.c.bf16 %v1511_v37, %v1510_v36 }
 0x781   :  { %1993 = vmatmul.mubr.msk.bf16.vlgmr.msra.gmra.mxu0 %vm68_vm0, %v1513_v40 }
 0x841   :  { %v1994_v30 = vpop.f32.mrf.mxu0 }
 0x842   :  { %v1591_v26 = vadd.f32 %v1994_v30, %v1802_v27 }
 0x843   :  { %v1582_v39 = vpop.f32.mrf.mxu0 }
 0x844   :  { %v1583_v46 = vadd.f32 %v1802_v27, %v1582_v39  ;;  %v1811_v38 = vmul.f32 -1.442695, %v1591_v26 }
 0x845   :  { %v1995_v50 = vpop.f32.mrf.mxu0 }
 0x846   :  { %v1809_v52 = vmul.f32 -1.442695, %v1583_v46  ;;  %v1594_v58 = vadd.f32 %v1995_v50, %v1802_v27 }
 0x847   :  { %v1585_v31 = vpop.f32.mrf.mxu0 }
 0x848   :  { %2209 = vpow2.f32 %v1809_v52  ;;  %v1812_v44 = vmul.f32 -1.442695, %v1594_v58  ;;  %v1586_v59 = vadd.f32 %v1802_v27, %v1585_v31 }
 0x849   :  { %2211 = vpow2.f32 %v1811_v38 }
 0x84a   :  { %2213 = vpow2.f32 %v1812_v44  ;;  %v1810_v0 = vmul.f32 -1.442695, %v1586_v59 }
 0x84c   :  { %2215 = vpow2.f32 %v1810_v0 }
 0x855   :  { %v2210_v33 = vpop.eup %2209 }
 0x856   :  { %v2212_v57 = vpop.eup %2211  ;;  %v1609_v29 = vadd.f32 1.0, %v2210_v33 }
 0x857   :  { %v2214_v3 = vpop.eup %2213  ;;  %v1611_v47 = vadd.f32 1.0, %v2212_v57 }
 0x858   :  { %v1612_v42 = vadd.f32 1.0, %v2214_v3  ;;  %2217 = vrcp.f32 %v1609_v29 }
 0x859   :  { %v2216_v4 = vpop.eup %2215 }
 0x85a   :  { %v1610_v49 = vadd.f32 1.0, %v2216_v4  ;;  %2219 = vrcp.f32 %v1612_v42 }
 0x85c   :  { %2221 = vrcp.f32 %v1610_v49 }
 0x85d   :  { %2223 = vrcp.f32 %v1611_v47 }
 0x865   :  { %v2218_v53 = vpop.eup %2217 }
 0x867   :  { %v2220_v20 = vpop.eup %2219 }
 0x869   :  { %v2222_v8 = vpop.eup %2221 }
 0x86a   :  { %v2224_v1 = vpop.eup %2223  ;;  %v1621_v62 = vpack.c.bf16 %v2222_v8, %v2218_v53 }
 0x86b   :  { %v1622_v28 = vpack.c.bf16 %v2220_v20, %v2224_v1 }
 0x86c   :  { %2012 = vmatprep.mubr.bf16.mxu1 %v1621_v62 }
 0x86d   :  { %2013 = vmatmul.mubr.bf16.vlgmr.msra.gmra.mxu1 %v1622_v28 }
 0x92d   :  { %v2014_v14 = vpop.f32.mrf.mxu1 }
 0x92e   :  { %v1734_v56 = vadd.f32 %v2014_v14, %v1813_v13 }
 0x92f   :  { %v1725_v2 = vpop.f32.mrf.mxu1 }
 0x930   :  { %v1742_v12 = vadd.f32 %v1734_v56, %v2729_v5  ;;  %v1726_v9 = vadd.f32 %v1813_v13, %v1725_v2 }
 0x931   :  { %v2015_v7 = vpop.f32.mrf.mxu1 }
 0x932   :  { %1746 = vst.msk [vmem:[#allocation5 + $0x10] sm:$0xff] %vm68_vm0, %v1742_v12  ;;  %v1740_v51 = vadd.f32 %v1726_v9, %v2731_v19  ;;  %v1737_v15 = vadd.f32 %v2015_v7, %v1813_v13 }
 0x933   :  { %v1728_v6 = vpop.f32.mrf.mxu1 }
 0x934   :  { %1744 = vst.msk [vmem:[#allocation5] sm:$0xff] %vm68_vm0, %v1740_v51  ;;  %v1743_v55 = vadd.f32 %v1737_v15, %v2741_v63  ;;  %v1729_v21 = vadd.f32 %v1813_v13, %v1728_v6 }
 0x936   :  { %1747 = vst.msk [vmem:[#allocation5 + $0x18] sm:$0xff] %vm68_vm0, %v1743_v55  ;;  %v1741_v60 = vadd.f32 %v1729_v21, %v2743_v25 }
 0x938   :  { %1745 = vst.msk [vmem:[#allocation5 + $0x8] sm:$0xff] %vm68_vm0, %v1741_v60 }
 0x939   :  { %2260 = shalt.err (!%p2257_p9)
}
 0x93a   :  { %s2286_s19 = smov 128   ;;  %s2287_s20 = smov 8  }
 0x93b   :  { %1759 = dma.vmem_to_hbm [thread:$0]  %s1754_s18, 512, %s2820_s4, [#allocation4], %s2286_s19, %s2286_s19, %s2287_s20  }
 0x93c   :  { %2271 = dma.done.wait [#allocation4], 512  }
 0x93d   :  { %2272 = vsyncadd [#allocation4], 4294966784 }
 0x93e   :  { %1763 = vsyncpa [#allocation3], 1 }
 0x93f   :  { %1764 = vsyncpa [#allocation4], 1 }

</bundles_post_ra>
